<compile_context>
chip_gen: v5e
topology: v5e:2x2
jax: 0.10.0
libtpu: 0.0.40
codegen_flags: <defaults>
</compile_context>

<pallas_src>
import numpy as np
import jax
import jax.numpy as jnp
from jax.experimental import pallas as pl
from jax.experimental.pallas import tpu as pltpu


# -----------------------------------------------------------------------------
# Trace-time (numpy) helpers: causal-mask tap pruning, per-tap roll amounts and
# 0/1 boundary masks.
# -----------------------------------------------------------------------------
def _nonzero_taps(kh, kw, mask_center):
    """(kh, kw) taps whose causal mask entry is 1 (see CausalConv2d.__init__)."""
    taps = []
    for a in range(kh):
        for b in range(kw):
            if a < kh // 2 or (a == kh // 2 and b < kw // 2 + int(not mask_center)):
                taps.append((a, b))
    return taps


def _tap_shifts_and_masks(n_imgs, H, W, taps, pad):
    """Lane-roll amounts + validity masks for a tile holding `n_imgs` whole images.

    Activations are channels-major (C, Mt) with Mt = n_imgs*H*W.  Tap (a, b) of
    a stride-1 conv with `pad` zero padding reads, for output pixel m, input
    pixel m + s with s = (a-pad)*W + (b-pad) — provided that source pixel lies
    inside the same image; otherwise it contributes 0.  So each tap becomes a
    lane roll by (-s) mod Mt plus a constant 0/1 mask (no cross-image leakage:
    when the mask is 1 the source index stays inside the same image).
    """
    HW = H * W
    Mt = n_imgs * HW
    shifts = []
    masks = np.zeros((len(taps), 1, Mt), np.float32)
    for t, (a, b) in enumerate(taps):
        dh, dw = a - pad, b - pad
        shifts.append((-(dh * W + dw)) % Mt)
        for i in range(H):
            if not (0 <= i + dh < H):
                continue
            for j in range(W):
                if not (0 <= j + dw < W):
                    continue
                for n in range(n_imgs):
                    masks[t, 0, n * HW + i * W + j] = 1.0
    return shifts, masks


# -----------------------------------------------------------------------------
# One-shot parameter repacking (host side, done ONCE per parameter set).
# -----------------------------------------------------------------------------
def prepare_params(params, mxu_dtype=jnp.float32):
    """Repack PixelCNN params into the operand layouts the fused kernel wants.

    Channels-major, causal taps pruned, 3x3 tap weights concatenated to one
    (Ci, 5*Ci) matrix, per-block weights stacked on a leading block axis.
    MXU weight operands are cast to `mxu_dtype` (use bf16 on v6e/v7x); biases,
    first-conv and last-conv weights stay f32 (VPU work)."""
    taps7 = _nonzero_taps(7, 7, True)     # 24 of 49 taps survive the mask
    taps3 = _nonzero_taps(3, 3, False)    # 5 of 9 taps survive the mask
    C = params["w_first"].shape[-1]
    Ci = C // 2

    w1 = np.asarray(params["w_first"], np.float32)                      # (7,7,1,C)
    w1cols = np.stack([w1[a, b, 0, :][:, None] for a, b in taps7], 0)   # (T7,C,1)
    bf = np.asarray(params["b_first"], np.float32).reshape(C, 1)

    wa, ba, w2c, b2, wc, bc = [], [], [], [], [], []
    for blk in params["blocks"]:
        wa.append(np.asarray(blk["w1"], np.float32)[0, 0].T)            # (Ci, C)
        ba.append(np.asarray(blk["b1"], np.float32).reshape(Ci, 1))
        w2 = np.asarray(blk["w2"], np.float32)                          # (3,3,Ci,Ci)
        w2c.append(np.concatenate([w2[a, b].T for a, b in taps3], 1))   # (Ci, 5*Ci)
        b2.append(np.asarray(blk["b2"], np.float32).reshape(Ci, 1))
        wc.append(np.asarray(blk["w3"], np.float32)[0, 0].T)            # (C, Ci)
        bc.append(np.asarray(blk["b3"], np.float32).reshape(C, 1))

    return dict(
        w1cols=jnp.asarray(w1cols),                       # f32: first conv is VPU work
        bf=jnp.asarray(bf),
        wa=jnp.asarray(np.stack(wa)).astype(mxu_dtype),   # (B, Ci, C)
        ba=jnp.asarray(np.stack(ba)),                     # (B, Ci, 1)
        w2=jnp.asarray(np.stack(w2c)).astype(mxu_dtype),  # (B, Ci, 5*Ci)
        b2=jnp.asarray(np.stack(b2)),                     # (B, Ci, 1)
        wc=jnp.asarray(np.stack(wc)).astype(mxu_dtype),   # (B, C, Ci)
        bc=jnp.asarray(np.stack(bc)),                     # (B, C, 1)
        wl=jnp.asarray(np.asarray(params["w_last"], np.float32).reshape(C, 1)),
        bl=jnp.asarray(np.asarray(params["b_last"], np.float32).reshape(1, 1)),
    )


# -----------------------------------------------------------------------------
# The fused forward kernel.  All activations are channels-major (C, Mt) slabs,
# Mt = images_per_tile * H * W, living entirely in VMEM / vregs.
# -----------------------------------------------------------------------------
def _make_fused_kernel(C, Mt, num_blocks, shifts7, shifts3, cdtype):
    def kernel(x_ref, m7_ref, m3_ref, w1_ref, bf_ref,
               wa_ref, ba_ref, w2_ref, b2_ref, wc_ref, bc_ref,
               wl_ref, bl_ref, o_ref):
        # --- first causal conv (1 -> C, k=7, mask_center=True) --------------
        # Cin == 1, so each of the 24 live taps is a rank-1 update:
        # lane roll (XLU) + 0/1 mask (VPU) + broadcast MAC (VPU).  No MXU,
        # no im2col slab, no HBM round trip.
        x_row = x_ref[...]                                   # (1, Mt) f32
        acc = jnp.zeros((C, Mt), jnp.float32)
        for t, s in enumerate(shifts7):
            r = pltpu.roll(x_row, shift=s, axis=1) if s else x_row
            r = r * m7_ref[t]                                # (1, Mt) mask
            acc = acc + w1_ref[t] * r                        # (C,1)*(1,Mt)
        h = acc + bf_ref[...]                                # (C, Mt)

        # --- residual blocks -------------------------------------------------
        for bi in range(num_blocks):
            # ReLU -> 1x1 conv (C -> Ci)
            u = jnp.dot(wa_ref[bi], jnp.maximum(h, 0.0).astype(cdtype),
                        preferred_element_type=jnp.float32) + ba_ref[bi]
            ru = jnp.maximum(u, 0.0)

            # ReLU -> 3x3 causal conv (mask_center=False): 5 live taps, each a
            # lane roll + boundary mask, stacked into one (5*Ci, Mt) slab so a
            # single K=5*Ci dot replaces five small dots (and the former dense
            # (M,M) shift-matrix matmuls).
            rows = []
            for t, s in enumerate(shifts3):
                if s:
                    r = pltpu.roll(ru, shift=s, axis=1) * m3_ref[t]
                else:
                    r = ru                                    # centre tap: identity
                rows.append(r)
            stk = jnp.concatenate(rows, axis=0)               # (5*Ci, Mt)
            v = jnp.dot(w2_ref[bi], stk.astype(cdtype),
                        preferred_element_type=jnp.float32) + b2_ref[bi]

            # ReLU -> 1x1 conv (Ci -> C), fused double residual:
            # PixelCNN.forward: x = x + layer(x), layer(x) = x + block(x)
            #   => h_new = 2*h + block(h)
            c3 = jnp.dot(wc_ref[bi], jnp.maximum(v, 0.0).astype(cdtype),
                         preferred_element_type=jnp.float32) + bc_ref[bi]
            h = 2.0 * h + c3

        # --- last: ReLU -> 1x1 conv (C -> 1) as VPU mul + sublane reduction --
        # (avoids one exposed MXU push/drain right before the store)
        y = jnp.sum(wl_ref[...] * jnp.maximum(h, 0.0), axis=0, keepdims=True)
        o_ref[...] = (y + bl_ref[...]).astype(o_ref.dtype)    # lane-dense (1, Mt)

    return kernel


# -----------------------------------------------------------------------------
# Forward wrapper: a reshape + one pallas_call.  All parameter packing was
# hoisted into prepare_params(); the boundary masks are trace-time numpy
# constants (independent of batch content).
# -----------------------------------------------------------------------------
@jax.jit
def pixelcnn_forward_pallas(packed, x_nchw):
    N, cin, H, W = x_nchw.shape
    assert cin == 1
    C = packed["bf"].shape[0]
    num_blocks = packed["wa"].shape[0]
    cdtype = packed["wa"].dtype

    taps7 = _nonzero_taps(7, 7, True)
    taps3 = _nonzero_taps(3, 3, False)

    HW = H * W
    # Tile the batch into whole-image, lane-multiple blocks (grid axis is
    # "parallel": both TensorCores on v7x, a cheap sequential loop on v5e/v6e).
    ipt = N
    for cand in range(1, N + 1):
        if N % cand == 0 and (cand * HW) % 128 == 0:
            ipt = cand
            break
    num_tiles = N // ipt
    Mt = ipt * HW

    shifts7, m7 = _tap_shifts_and_masks(ipt, H, W, taps7, pad=3)
    shifts3, m3 = _tap_shifts_and_masks(ipt, H, W, taps3, pad=1)

    x_row = x_nchw.reshape(1, N * HW)

    def rep(shape):   # whole-array operand, same block for every grid step
        return pl.BlockSpec(shape, lambda b: (0,) * len(shape))

    args = (x_row, jnp.asarray(m7), jnp.asarray(m3),
            packed["w1cols"], packed["bf"],
            packed["wa"], packed["ba"], packed["w2"], packed["b2"],
            packed["wc"], packed["bc"], packed["wl"], packed["bl"])

    in_specs = [pl.BlockSpec((1, Mt), lambda b: (0, b))] + \
               [rep(a.shape) for a in args[1:]]

    y = pl.pallas_call(
        _make_fused_kernel(C, Mt, num_blocks, shifts7, shifts3, cdtype),
        grid=(num_tiles,),
        out_shape=jax.ShapeDtypeStruct((1, N * HW), x_nchw.dtype),
        in_specs=in_specs,
        out_specs=pl.BlockSpec((1, Mt), lambda b: (0, b)),
        compiler_params=pltpu.CompilerParams(
            dimension_semantics=("parallel",)),
    )(*args)
    return y.reshape(N, 1, H, W)


# -----------------------------------------------------------------------------
# Parameter construction (deterministic, synthetic) + causal masks.
# -----------------------------------------------------------------------------
def causal_mask(kh, kw, mask_center):
    m = np.zeros((kh, kw, 1, 1), np.float32)
    m[: kh // 2, :, :, :] = 1.0
    m[kh // 2, : kw // 2 + int(not mask_center), :, :] = 1.0
    return jnp.asarray(m)


def init_pixelcnn_params(key, residual_channels=32, number_residual=1):
    C = residual_channels
    Ci = C // 2

    def rnd(key, shape, fan_in):
        bound = 1.0 / np.sqrt(max(fan_in, 1))
        return jax.random.uniform(key, shape, jnp.float32, -bound, bound)

    keys = jax.random.split(key, 2 + 8 * number_residual + 2)
    k = iter(keys)

    params = {}
    w_first = rnd(next(k), (7, 7, 1, C), 1 * 7 * 7) * causal_mask(7, 7, True)
    b_first = rnd(next(k), (C,), 1 * 7 * 7)
    params["w_first"], params["b_first"] = w_first, b_first

    blocks = []
    for _ in range(number_residual):
        w1 = rnd(next(k), (1, 1, C, Ci), C * 1 * 1)
        bb1 = rnd(next(k), (Ci,), C * 1 * 1)
        w2 = rnd(next(k), (3, 3, Ci, Ci), Ci * 3 * 3) * causal_mask(3, 3, False)
        bb2 = rnd(next(k), (Ci,), Ci * 3 * 3)
        w3 = rnd(next(k), (1, 1, Ci, C), Ci * 1 * 1)
        bb3 = rnd(next(k), (C,), Ci * 1 * 1)
        blocks.append(dict(w1=w1, b1=bb1, w2=w2, b2=bb2, w3=w3, b3=bb3))
    params["blocks"] = blocks

    params["w_last"] = rnd(next(k), (1, 1, C, 1), C * 1 * 1)
    params["b_last"] = rnd(next(k), (1,), C * 1 * 1)
    return params


# -----------------------------------------------------------------------------
# Pure-JAX reference (lax.conv) for correctness checking.
# -----------------------------------------------------------------------------
def _conv_ref(x, w, b, pad, relu_input):
    if relu_input:
        x = jax.nn.relu(x)
    y = jax.lax.conv_general_dilated(
        x, w, window_strides=(1, 1),
        padding=((pad, pad), (pad, pad)),
        dimension_numbers=("NHWC", "HWIO", "NHWC"))
    return y + b


def pixelcnn_forward_ref(params, x_nchw):
    x = jnp.transpose(x_nchw, (0, 2, 3, 1))
    h = _conv_ref(x, params["w_first"], params["b_first"], 3, False)
    for blk in params["blocks"]:
        b1 = _conv_ref(h, blk["w1"], blk["b1"], 0, True)
        b2 = _conv_ref(b1, blk["w2"], blk["b2"], 1, True)
        b3 = _conv_ref(b2, blk["w3"], blk["b3"], 0, True)
        h = 2.0 * h + b3
    y = _conv_ref(h, params["w_last"], params["b_last"], 0, True)
    return jnp.transpose(y, (0, 3, 1, 2))


if __name__ == "__main__":
    key = jax.random.PRNGKey(0)
    k_param, k_x = jax.random.split(key)

    batch = 2
    residual_channels = 32
    number_residual = 1
    H = Wd = 8  # input_shape = (1, 8, 8)

    params = init_pixelcnn_params(k_param, residual_channels, number_residual)

    # spins in {0, 1}, shape (N, 1, H, W) as in the PyTorch module (NCHW)
    x = jax.random.bernoulli(k_x, 0.5, (batch, 1, H, Wd)).astype(jnp.float32)

    ref = jax.block_until_ready(pixelcnn_forward_ref(params, x))

    # f32 MXU operands: tight comparison against the f32 lax.conv reference.
    packed = prepare_params(params, mxu_dtype=jnp.float32)      # one-shot repack
    out = jax.block_until_ready(pixelcnn_forward_pallas(packed, x))
    assert out.shape == (batch, 1, Wd, Wd) or out.shape == (batch, 1, H, Wd), out.shape
    np.testing.assert_allclose(np.asarray(out), np.asarray(ref),
                               rtol=1e-5, atol=1e-5)

    # bf16 MXU operands (recommended on v6e/v7x): f32 accumulation and f32 VPU
    # math, so only operand rounding differs -> relaxed tolerance.
    packed_bf16 = prepare_params(params, mxu_dtype=jnp.bfloat16)
    out_bf16 = jax.block_until_ready(pixelcnn_forward_pallas(packed_bf16, x))
    np.testing.assert_allclose(np.asarray(out_bf16), np.asarray(ref),
                               rtol=1e-1, atol=1e-1)

    print("KERNEL_OK")
</pallas_src>

<mosaic_0001>
module attributes {stable_mosaic.version = 11 : i64} {
  func.func @kernel(%arg0: i32, %arg1: memref<1x128xf32, #tpu.memory_space<vmem>>, %arg2: memref<24x1x128xf32, #tpu.memory_space<vmem>>, %arg3: memref<5x1x128xf32, #tpu.memory_space<vmem>>, %arg4: memref<24x32x1xf32, #tpu.memory_space<vmem>>, %arg5: memref<32x1xf32, #tpu.memory_space<vmem>>, %arg6: memref<1x16x32xf32, #tpu.memory_space<vmem>>, %arg7: memref<1x16x1xf32, #tpu.memory_space<vmem>>, %arg8: memref<1x16x80xf32, #tpu.memory_space<vmem>>, %arg9: memref<1x16x1xf32, #tpu.memory_space<vmem>>, %arg10: memref<1x32x16xf32, #tpu.memory_space<vmem>>, %arg11: memref<1x32x1xf32, #tpu.memory_space<vmem>>, %arg12: memref<32x1xf32, #tpu.memory_space<vmem>>, %arg13: memref<1x1xf32, #tpu.memory_space<vmem>>, %arg14: memref<1x128xf32, #tpu.memory_space<vmem>>) attributes {dimension_semantics = [#tpu.dimension_semantics<parallel>], iteration_bounds = array<i64: 1>, scalar_prefetch = 0 : i64, scratch_operands = 0 : i64, tpu.core_type = #tpu.core_type<tc>, window_params = [{transform_indices = @transform_0, window_bounds = array<i64: 1, 128>}, {pipeline_mode = #tpu.pipeline_mode<synchronous>, transform_indices = @transform_1, window_bounds = array<i64: 24, 1, 128>}, {pipeline_mode = #tpu.pipeline_mode<synchronous>, transform_indices = @transform_2, window_bounds = array<i64: 5, 1, 128>}, {pipeline_mode = #tpu.pipeline_mode<synchronous>, transform_indices = @transform_3, window_bounds = array<i64: 24, 32, 1>}, {pipeline_mode = #tpu.pipeline_mode<synchronous>, transform_indices = @transform_4, window_bounds = array<i64: 32, 1>}, {pipeline_mode = #tpu.pipeline_mode<synchronous>, transform_indices = @transform_5, window_bounds = array<i64: 1, 16, 32>}, {pipeline_mode = #tpu.pipeline_mode<synchronous>, transform_indices = @transform_6, window_bounds = array<i64: 1, 16, 1>}, {pipeline_mode = #tpu.pipeline_mode<synchronous>, transform_indices = @transform_7, window_bounds = array<i64: 1, 16, 80>}, {pipeline_mode = #tpu.pipeline_mode<synchronous>, transform_indices = @transform_8, window_bounds = array<i64: 1, 16, 1>}, {pipeline_mode = #tpu.pipeline_mode<synchronous>, transform_indices = @transform_9, window_bounds = array<i64: 1, 32, 16>}, {pipeline_mode = #tpu.pipeline_mode<synchronous>, transform_indices = @transform_10, window_bounds = array<i64: 1, 32, 1>}, {pipeline_mode = #tpu.pipeline_mode<synchronous>, transform_indices = @transform_11, window_bounds = array<i64: 32, 1>}, {pipeline_mode = #tpu.pipeline_mode<synchronous>, transform_indices = @transform_12, window_bounds = array<i64: 1, 1>}, {transform_indices = @transform_13, window_bounds = array<i64: 1, 128>}]} {
    %c0 = arith.constant 0 : index
    %c0_0 = arith.constant 0 : index
    %0 = vector.load %arg1[%c0, %c0_0] : memref<1x128xf32, #tpu.memory_space<vmem>>, vector<1x128xf32>
    %cst = arith.constant 0.000000e+00 : f32
    %1 = vector.broadcast %cst : f32 to vector<32x128xf32>
    %c27_i32 = arith.constant 27 : i32
    %2 = tpu.dynamic_rotate %0 by %c27_i32 dim 1 : vector<1x128xf32>, i32 -> vector<1x128xf32>
    %c0_1 = arith.constant 0 : index
    %c0_2 = arith.constant 0 : index
    %c0_3 = arith.constant 0 : index
    %3 = vector.load %arg2[%c0_1, %c0_2, %c0_3] : memref<24x1x128xf32, #tpu.memory_space<vmem>>, vector<1x1x128xf32>
    %4 = vector.shape_cast %3 : vector<1x1x128xf32> to vector<1x128xf32>
    %5 = arith.mulf %2, %4 : vector<1x128xf32>
    %c0_4 = arith.constant 0 : index
    %c0_5 = arith.constant 0 : index
    %c0_6 = arith.constant 0 : index
    %6 = vector.load %arg4[%c0_4, %c0_5, %c0_6] : memref<24x32x1xf32, #tpu.memory_space<vmem>>, vector<1x32x1xf32>
    %7 = vector.shape_cast %6 : vector<1x32x1xf32> to vector<32x1xf32>
    %8 = vector.broadcast %7 : vector<32x1xf32> to vector<32x128xf32>
    %9 = vector.broadcast %5 : vector<1x128xf32> to vector<32x128xf32>
    %10 = arith.mulf %8, %9 : vector<32x128xf32>
    %11 = arith.addf %1, %10 : vector<32x128xf32>
    %c26_i32 = arith.constant 26 : i32
    %12 = tpu.dynamic_rotate %0 by %c26_i32 dim 1 : vector<1x128xf32>, i32 -> vector<1x128xf32>
    %c1 = arith.constant 1 : index
    %c0_7 = arith.constant 0 : index
    %c0_8 = arith.constant 0 : index
    %13 = vector.load %arg2[%c1, %c0_7, %c0_8] : memref<24x1x128xf32, #tpu.memory_space<vmem>>, vector<1x1x128xf32>
    %14 = vector.shape_cast %13 : vector<1x1x128xf32> to vector<1x128xf32>
    %15 = arith.mulf %12, %14 : vector<1x128xf32>
    %c1_9 = arith.constant 1 : index
    %c0_10 = arith.constant 0 : index
    %c0_11 = arith.constant 0 : index
    %16 = vector.load %arg4[%c1_9, %c0_10, %c0_11] : memref<24x32x1xf32, #tpu.memory_space<vmem>>, vector<1x32x1xf32>
    %17 = vector.shape_cast %16 : vector<1x32x1xf32> to vector<32x1xf32>
    %18 = vector.broadcast %17 : vector<32x1xf32> to vector<32x128xf32>
    %19 = vector.broadcast %15 : vector<1x128xf32> to vector<32x128xf32>
    %20 = arith.mulf %18, %19 : vector<32x128xf32>
    %21 = arith.addf %11, %20 : vector<32x128xf32>
    %c25_i32 = arith.constant 25 : i32
    %22 = tpu.dynamic_rotate %0 by %c25_i32 dim 1 : vector<1x128xf32>, i32 -> vector<1x128xf32>
    %c2 = arith.constant 2 : index
    %c0_12 = arith.constant 0 : index
    %c0_13 = arith.constant 0 : index
    %23 = vector.load %arg2[%c2, %c0_12, %c0_13] : memref<24x1x128xf32, #tpu.memory_space<vmem>>, vector<1x1x128xf32>
    %24 = vector.shape_cast %23 : vector<1x1x128xf32> to vector<1x128xf32>
    %25 = arith.mulf %22, %24 : vector<1x128xf32>
    %c2_14 = arith.constant 2 : index
    %c0_15 = arith.constant 0 : index
    %c0_16 = arith.constant 0 : index
    %26 = vector.load %arg4[%c2_14, %c0_15, %c0_16] : memref<24x32x1xf32, #tpu.memory_space<vmem>>, vector<1x32x1xf32>
    %27 = vector.shape_cast %26 : vector<1x32x1xf32> to vector<32x1xf32>
    %28 = vector.broadcast %27 : vector<32x1xf32> to vector<32x128xf32>
    %29 = vector.broadcast %25 : vector<1x128xf32> to vector<32x128xf32>
    %30 = arith.mulf %28, %29 : vector<32x128xf32>
    %31 = arith.addf %21, %30 : vector<32x128xf32>
    %c24_i32 = arith.constant 24 : i32
    %32 = tpu.dynamic_rotate %0 by %c24_i32 dim 1 : vector<1x128xf32>, i32 -> vector<1x128xf32>
    %c3 = arith.constant 3 : index
    %c0_17 = arith.constant 0 : index
    %c0_18 = arith.constant 0 : index
    %33 = vector.load %arg2[%c3, %c0_17, %c0_18] : memref<24x1x128xf32, #tpu.memory_space<vmem>>, vector<1x1x128xf32>
    %34 = vector.shape_cast %33 : vector<1x1x128xf32> to vector<1x128xf32>
    %35 = arith.mulf %32, %34 : vector<1x128xf32>
    %c3_19 = arith.constant 3 : index
    %c0_20 = arith.constant 0 : index
    %c0_21 = arith.constant 0 : index
    %36 = vector.load %arg4[%c3_19, %c0_20, %c0_21] : memref<24x32x1xf32, #tpu.memory_space<vmem>>, vector<1x32x1xf32>
    %37 = vector.shape_cast %36 : vector<1x32x1xf32> to vector<32x1xf32>
    %38 = vector.broadcast %37 : vector<32x1xf32> to vector<32x128xf32>
    %39 = vector.broadcast %35 : vector<1x128xf32> to vector<32x128xf32>
    %40 = arith.mulf %38, %39 : vector<32x128xf32>
    %41 = arith.addf %31, %40 : vector<32x128xf32>
    %c23_i32 = arith.constant 23 : i32
    %42 = tpu.dynamic_rotate %0 by %c23_i32 dim 1 : vector<1x128xf32>, i32 -> vector<1x128xf32>
    %c4 = arith.constant 4 : index
    %c0_22 = arith.constant 0 : index
    %c0_23 = arith.constant 0 : index
    %43 = vector.load %arg2[%c4, %c0_22, %c0_23] : memref<24x1x128xf32, #tpu.memory_space<vmem>>, vector<1x1x128xf32>
    %44 = vector.shape_cast %43 : vector<1x1x128xf32> to vector<1x128xf32>
    %45 = arith.mulf %42, %44 : vector<1x128xf32>
    %c4_24 = arith.constant 4 : index
    %c0_25 = arith.constant 0 : index
    %c0_26 = arith.constant 0 : index
    %46 = vector.load %arg4[%c4_24, %c0_25, %c0_26] : memref<24x32x1xf32, #tpu.memory_space<vmem>>, vector<1x32x1xf32>
    %47 = vector.shape_cast %46 : vector<1x32x1xf32> to vector<32x1xf32>
    %48 = vector.broadcast %47 : vector<32x1xf32> to vector<32x128xf32>
    %49 = vector.broadcast %45 : vector<1x128xf32> to vector<32x128xf32>
    %50 = arith.mulf %48, %49 : vector<32x128xf32>
    %51 = arith.addf %41, %50 : vector<32x128xf32>
    %c22_i32 = arith.constant 22 : i32
    %52 = tpu.dynamic_rotate %0 by %c22_i32 dim 1 : vector<1x128xf32>, i32 -> vector<1x128xf32>
    %c5 = arith.constant 5 : index
    %c0_27 = arith.constant 0 : index
    %c0_28 = arith.constant 0 : index
    %53 = vector.load %arg2[%c5, %c0_27, %c0_28] : memref<24x1x128xf32, #tpu.memory_space<vmem>>, vector<1x1x128xf32>
    %54 = vector.shape_cast %53 : vector<1x1x128xf32> to vector<1x128xf32>
    %55 = arith.mulf %52, %54 : vector<1x128xf32>
    %c5_29 = arith.constant 5 : index
    %c0_30 = arith.constant 0 : index
    %c0_31 = arith.constant 0 : index
    %56 = vector.load %arg4[%c5_29, %c0_30, %c0_31] : memref<24x32x1xf32, #tpu.memory_space<vmem>>, vector<1x32x1xf32>
    %57 = vector.shape_cast %56 : vector<1x32x1xf32> to vector<32x1xf32>
    %58 = vector.broadcast %57 : vector<32x1xf32> to vector<32x128xf32>
    %59 = vector.broadcast %55 : vector<1x128xf32> to vector<32x128xf32>
    %60 = arith.mulf %58, %59 : vector<32x128xf32>
    %61 = arith.addf %51, %60 : vector<32x128xf32>
    %c21_i32 = arith.constant 21 : i32
    %62 = tpu.dynamic_rotate %0 by %c21_i32 dim 1 : vector<1x128xf32>, i32 -> vector<1x128xf32>
    %c6 = arith.constant 6 : index
    %c0_32 = arith.constant 0 : index
    %c0_33 = arith.constant 0 : index
    %63 = vector.load %arg2[%c6, %c0_32, %c0_33] : memref<24x1x128xf32, #tpu.memory_space<vmem>>, vector<1x1x128xf32>
    %64 = vector.shape_cast %63 : vector<1x1x128xf32> to vector<1x128xf32>
    %65 = arith.mulf %62, %64 : vector<1x128xf32>
    %c6_34 = arith.constant 6 : index
    %c0_35 = arith.constant 0 : index
    %c0_36 = arith.constant 0 : index
    %66 = vector.load %arg4[%c6_34, %c0_35, %c0_36] : memref<24x32x1xf32, #tpu.memory_space<vmem>>, vector<1x32x1xf32>
    %67 = vector.shape_cast %66 : vector<1x32x1xf32> to vector<32x1xf32>
    %68 = vector.broadcast %67 : vector<32x1xf32> to vector<32x128xf32>
    %69 = vector.broadcast %65 : vector<1x128xf32> to vector<32x128xf32>
    %70 = arith.mulf %68, %69 : vector<32x128xf32>
    %71 = arith.addf %61, %70 : vector<32x128xf32>
    %c19_i32 = arith.constant 19 : i32
    %72 = tpu.dynamic_rotate %0 by %c19_i32 dim 1 : vector<1x128xf32>, i32 -> vector<1x128xf32>
    %c7 = arith.constant 7 : index
    %c0_37 = arith.constant 0 : index
    %c0_38 = arith.constant 0 : index
    %73 = vector.load %arg2[%c7, %c0_37, %c0_38] : memref<24x1x128xf32, #tpu.memory_space<vmem>>, vector<1x1x128xf32>
    %74 = vector.shape_cast %73 : vector<1x1x128xf32> to vector<1x128xf32>
    %75 = arith.mulf %72, %74 : vector<1x128xf32>
    %c7_39 = arith.constant 7 : index
    %c0_40 = arith.constant 0 : index
    %c0_41 = arith.constant 0 : index
    %76 = vector.load %arg4[%c7_39, %c0_40, %c0_41] : memref<24x32x1xf32, #tpu.memory_space<vmem>>, vector<1x32x1xf32>
    %77 = vector.shape_cast %76 : vector<1x32x1xf32> to vector<32x1xf32>
    %78 = vector.broadcast %77 : vector<32x1xf32> to vector<32x128xf32>
    %79 = vector.broadcast %75 : vector<1x128xf32> to vector<32x128xf32>
    %80 = arith.mulf %78, %79 : vector<32x128xf32>
    %81 = arith.addf %71, %80 : vector<32x128xf32>
    %c18_i32 = arith.constant 18 : i32
    %82 = tpu.dynamic_rotate %0 by %c18_i32 dim 1 : vector<1x128xf32>, i32 -> vector<1x128xf32>
    %c8 = arith.constant 8 : index
    %c0_42 = arith.constant 0 : index
    %c0_43 = arith.constant 0 : index
    %83 = vector.load %arg2[%c8, %c0_42, %c0_43] : memref<24x1x128xf32, #tpu.memory_space<vmem>>, vector<1x1x128xf32>
    %84 = vector.shape_cast %83 : vector<1x1x128xf32> to vector<1x128xf32>
    %85 = arith.mulf %82, %84 : vector<1x128xf32>
    %c8_44 = arith.constant 8 : index
    %c0_45 = arith.constant 0 : index
    %c0_46 = arith.constant 0 : index
    %86 = vector.load %arg4[%c8_44, %c0_45, %c0_46] : memref<24x32x1xf32, #tpu.memory_space<vmem>>, vector<1x32x1xf32>
    %87 = vector.shape_cast %86 : vector<1x32x1xf32> to vector<32x1xf32>
    %88 = vector.broadcast %87 : vector<32x1xf32> to vector<32x128xf32>
    %89 = vector.broadcast %85 : vector<1x128xf32> to vector<32x128xf32>
    %90 = arith.mulf %88, %89 : vector<32x128xf32>
    %91 = arith.addf %81, %90 : vector<32x128xf32>
    %c17_i32 = arith.constant 17 : i32
    %92 = tpu.dynamic_rotate %0 by %c17_i32 dim 1 : vector<1x128xf32>, i32 -> vector<1x128xf32>
    %c9 = arith.constant 9 : index
    %c0_47 = arith.constant 0 : index
    %c0_48 = arith.constant 0 : index
    %93 = vector.load %arg2[%c9, %c0_47, %c0_48] : memref<24x1x128xf32, #tpu.memory_space<vmem>>, vector<1x1x128xf32>
    %94 = vector.shape_cast %93 : vector<1x1x128xf32> to vector<1x128xf32>
    %95 = arith.mulf %92, %94 : vector<1x128xf32>
    %c9_49 = arith.constant 9 : index
    %c0_50 = arith.constant 0 : index
    %c0_51 = arith.constant 0 : index
    %96 = vector.load %arg4[%c9_49, %c0_50, %c0_51] : memref<24x32x1xf32, #tpu.memory_space<vmem>>, vector<1x32x1xf32>
    %97 = vector.shape_cast %96 : vector<1x32x1xf32> to vector<32x1xf32>
    %98 = vector.broadcast %97 : vector<32x1xf32> to vector<32x128xf32>
    %99 = vector.broadcast %95 : vector<1x128xf32> to vector<32x128xf32>
    %100 = arith.mulf %98, %99 : vector<32x128xf32>
    %101 = arith.addf %91, %100 : vector<32x128xf32>
    %c16_i32 = arith.constant 16 : i32
    %102 = tpu.dynamic_rotate %0 by %c16_i32 dim 1 : vector<1x128xf32>, i32 -> vector<1x128xf32>
    %c10 = arith.constant 10 : index
    %c0_52 = arith.constant 0 : index
    %c0_53 = arith.constant 0 : index
    %103 = vector.load %arg2[%c10, %c0_52, %c0_53] : memref<24x1x128xf32, #tpu.memory_space<vmem>>, vector<1x1x128xf32>
    %104 = vector.shape_cast %103 : vector<1x1x128xf32> to vector<1x128xf32>
    %105 = arith.mulf %102, %104 : vector<1x128xf32>
    %c10_54 = arith.constant 10 : index
    %c0_55 = arith.constant 0 : index
    %c0_56 = arith.constant 0 : index
    %106 = vector.load %arg4[%c10_54, %c0_55, %c0_56] : memref<24x32x1xf32, #tpu.memory_space<vmem>>, vector<1x32x1xf32>
    %107 = vector.shape_cast %106 : vector<1x32x1xf32> to vector<32x1xf32>
    %108 = vector.broadcast %107 : vector<32x1xf32> to vector<32x128xf32>
    %109 = vector.broadcast %105 : vector<1x128xf32> to vector<32x128xf32>
    %110 = arith.mulf %108, %109 : vector<32x128xf32>
    %111 = arith.addf %101, %110 : vector<32x128xf32>
    %c15_i32 = arith.constant 15 : i32
    %112 = tpu.dynamic_rotate %0 by %c15_i32 dim 1 : vector<1x128xf32>, i32 -> vector<1x128xf32>
    %c11 = arith.constant 11 : index
    %c0_57 = arith.constant 0 : index
    %c0_58 = arith.constant 0 : index
    %113 = vector.load %arg2[%c11, %c0_57, %c0_58] : memref<24x1x128xf32, #tpu.memory_space<vmem>>, vector<1x1x128xf32>
    %114 = vector.shape_cast %113 : vector<1x1x128xf32> to vector<1x128xf32>
    %115 = arith.mulf %112, %114 : vector<1x128xf32>
    %c11_59 = arith.constant 11 : index
    %c0_60 = arith.constant 0 : index
    %c0_61 = arith.constant 0 : index
    %116 = vector.load %arg4[%c11_59, %c0_60, %c0_61] : memref<24x32x1xf32, #tpu.memory_space<vmem>>, vector<1x32x1xf32>
    %117 = vector.shape_cast %116 : vector<1x32x1xf32> to vector<32x1xf32>
    %118 = vector.broadcast %117 : vector<32x1xf32> to vector<32x128xf32>
    %119 = vector.broadcast %115 : vector<1x128xf32> to vector<32x128xf32>
    %120 = arith.mulf %118, %119 : vector<32x128xf32>
    %121 = arith.addf %111, %120 : vector<32x128xf32>
    %c14_i32 = arith.constant 14 : i32
    %122 = tpu.dynamic_rotate %0 by %c14_i32 dim 1 : vector<1x128xf32>, i32 -> vector<1x128xf32>
    %c12 = arith.constant 12 : index
    %c0_62 = arith.constant 0 : index
    %c0_63 = arith.constant 0 : index
    %123 = vector.load %arg2[%c12, %c0_62, %c0_63] : memref<24x1x128xf32, #tpu.memory_space<vmem>>, vector<1x1x128xf32>
    %124 = vector.shape_cast %123 : vector<1x1x128xf32> to vector<1x128xf32>
    %125 = arith.mulf %122, %124 : vector<1x128xf32>
    %c12_64 = arith.constant 12 : index
    %c0_65 = arith.constant 0 : index
    %c0_66 = arith.constant 0 : index
    %126 = vector.load %arg4[%c12_64, %c0_65, %c0_66] : memref<24x32x1xf32, #tpu.memory_space<vmem>>, vector<1x32x1xf32>
    %127 = vector.shape_cast %126 : vector<1x32x1xf32> to vector<32x1xf32>
    %128 = vector.broadcast %127 : vector<32x1xf32> to vector<32x128xf32>
    %129 = vector.broadcast %125 : vector<1x128xf32> to vector<32x128xf32>
    %130 = arith.mulf %128, %129 : vector<32x128xf32>
    %131 = arith.addf %121, %130 : vector<32x128xf32>
    %c13_i32 = arith.constant 13 : i32
    %132 = tpu.dynamic_rotate %0 by %c13_i32 dim 1 : vector<1x128xf32>, i32 -> vector<1x128xf32>
    %c13 = arith.constant 13 : index
    %c0_67 = arith.constant 0 : index
    %c0_68 = arith.constant 0 : index
    %133 = vector.load %arg2[%c13, %c0_67, %c0_68] : memref<24x1x128xf32, #tpu.memory_space<vmem>>, vector<1x1x128xf32>
    %134 = vector.shape_cast %133 : vector<1x1x128xf32> to vector<1x128xf32>
    %135 = arith.mulf %132, %134 : vector<1x128xf32>
    %c13_69 = arith.constant 13 : index
    %c0_70 = arith.constant 0 : index
    %c0_71 = arith.constant 0 : index
    %136 = vector.load %arg4[%c13_69, %c0_70, %c0_71] : memref<24x32x1xf32, #tpu.memory_space<vmem>>, vector<1x32x1xf32>
    %137 = vector.shape_cast %136 : vector<1x32x1xf32> to vector<32x1xf32>
    %138 = vector.broadcast %137 : vector<32x1xf32> to vector<32x128xf32>
    %139 = vector.broadcast %135 : vector<1x128xf32> to vector<32x128xf32>
    %140 = arith.mulf %138, %139 : vector<32x128xf32>
    %141 = arith.addf %131, %140 : vector<32x128xf32>
    %c11_i32 = arith.constant 11 : i32
    %142 = tpu.dynamic_rotate %0 by %c11_i32 dim 1 : vector<1x128xf32>, i32 -> vector<1x128xf32>
    %c14 = arith.constant 14 : index
    %c0_72 = arith.constant 0 : index
    %c0_73 = arith.constant 0 : index
    %143 = vector.load %arg2[%c14, %c0_72, %c0_73] : memref<24x1x128xf32, #tpu.memory_space<vmem>>, vector<1x1x128xf32>
    %144 = vector.shape_cast %143 : vector<1x1x128xf32> to vector<1x128xf32>
    %145 = arith.mulf %142, %144 : vector<1x128xf32>
    %c14_74 = arith.constant 14 : index
    %c0_75 = arith.constant 0 : index
    %c0_76 = arith.constant 0 : index
    %146 = vector.load %arg4[%c14_74, %c0_75, %c0_76] : memref<24x32x1xf32, #tpu.memory_space<vmem>>, vector<1x32x1xf32>
    %147 = vector.shape_cast %146 : vector<1x32x1xf32> to vector<32x1xf32>
    %148 = vector.broadcast %147 : vector<32x1xf32> to vector<32x128xf32>
    %149 = vector.broadcast %145 : vector<1x128xf32> to vector<32x128xf32>
    %150 = arith.mulf %148, %149 : vector<32x128xf32>
    %151 = arith.addf %141, %150 : vector<32x128xf32>
    %c10_i32 = arith.constant 10 : i32
    %152 = tpu.dynamic_rotate %0 by %c10_i32 dim 1 : vector<1x128xf32>, i32 -> vector<1x128xf32>
    %c15 = arith.constant 15 : index
    %c0_77 = arith.constant 0 : index
    %c0_78 = arith.constant 0 : index
    %153 = vector.load %arg2[%c15, %c0_77, %c0_78] : memref<24x1x128xf32, #tpu.memory_space<vmem>>, vector<1x1x128xf32>
    %154 = vector.shape_cast %153 : vector<1x1x128xf32> to vector<1x128xf32>
    %155 = arith.mulf %152, %154 : vector<1x128xf32>
    %c15_79 = arith.constant 15 : index
    %c0_80 = arith.constant 0 : index
    %c0_81 = arith.constant 0 : index
    %156 = vector.load %arg4[%c15_79, %c0_80, %c0_81] : memref<24x32x1xf32, #tpu.memory_space<vmem>>, vector<1x32x1xf32>
    %157 = vector.shape_cast %156 : vector<1x32x1xf32> to vector<32x1xf32>
    %158 = vector.broadcast %157 : vector<32x1xf32> to vector<32x128xf32>
    %159 = vector.broadcast %155 : vector<1x128xf32> to vector<32x128xf32>
    %160 = arith.mulf %158, %159 : vector<32x128xf32>
    %161 = arith.addf %151, %160 : vector<32x128xf32>
    %c9_i32 = arith.constant 9 : i32
    %162 = tpu.dynamic_rotate %0 by %c9_i32 dim 1 : vector<1x128xf32>, i32 -> vector<1x128xf32>
    %c16 = arith.constant 16 : index
    %c0_82 = arith.constant 0 : index
    %c0_83 = arith.constant 0 : index
    %163 = vector.load %arg2[%c16, %c0_82, %c0_83] : memref<24x1x128xf32, #tpu.memory_space<vmem>>, vector<1x1x128xf32>
    %164 = vector.shape_cast %163 : vector<1x1x128xf32> to vector<1x128xf32>
    %165 = arith.mulf %162, %164 : vector<1x128xf32>
    %c16_84 = arith.constant 16 : index
    %c0_85 = arith.constant 0 : index
    %c0_86 = arith.constant 0 : index
    %166 = vector.load %arg4[%c16_84, %c0_85, %c0_86] : memref<24x32x1xf32, #tpu.memory_space<vmem>>, vector<1x32x1xf32>
    %167 = vector.shape_cast %166 : vector<1x32x1xf32> to vector<32x1xf32>
    %168 = vector.broadcast %167 : vector<32x1xf32> to vector<32x128xf32>
    %169 = vector.broadcast %165 : vector<1x128xf32> to vector<32x128xf32>
    %170 = arith.mulf %168, %169 : vector<32x128xf32>
    %171 = arith.addf %161, %170 : vector<32x128xf32>
    %c8_i32 = arith.constant 8 : i32
    %172 = tpu.dynamic_rotate %0 by %c8_i32 dim 1 : vector<1x128xf32>, i32 -> vector<1x128xf32>
    %c17 = arith.constant 17 : index
    %c0_87 = arith.constant 0 : index
    %c0_88 = arith.constant 0 : index
    %173 = vector.load %arg2[%c17, %c0_87, %c0_88] : memref<24x1x128xf32, #tpu.memory_space<vmem>>, vector<1x1x128xf32>
    %174 = vector.shape_cast %173 : vector<1x1x128xf32> to vector<1x128xf32>
    %175 = arith.mulf %172, %174 : vector<1x128xf32>
    %c17_89 = arith.constant 17 : index
    %c0_90 = arith.constant 0 : index
    %c0_91 = arith.constant 0 : index
    %176 = vector.load %arg4[%c17_89, %c0_90, %c0_91] : memref<24x32x1xf32, #tpu.memory_space<vmem>>, vector<1x32x1xf32>
    %177 = vector.shape_cast %176 : vector<1x32x1xf32> to vector<32x1xf32>
    %178 = vector.broadcast %177 : vector<32x1xf32> to vector<32x128xf32>
    %179 = vector.broadcast %175 : vector<1x128xf32> to vector<32x128xf32>
    %180 = arith.mulf %178, %179 : vector<32x128xf32>
    %181 = arith.addf %171, %180 : vector<32x128xf32>
    %c7_i32 = arith.constant 7 : i32
    %182 = tpu.dynamic_rotate %0 by %c7_i32 dim 1 : vector<1x128xf32>, i32 -> vector<1x128xf32>
    %c18 = arith.constant 18 : index
    %c0_92 = arith.constant 0 : index
    %c0_93 = arith.constant 0 : index
    %183 = vector.load %arg2[%c18, %c0_92, %c0_93] : memref<24x1x128xf32, #tpu.memory_space<vmem>>, vector<1x1x128xf32>
    %184 = vector.shape_cast %183 : vector<1x1x128xf32> to vector<1x128xf32>
    %185 = arith.mulf %182, %184 : vector<1x128xf32>
    %c18_94 = arith.constant 18 : index
    %c0_95 = arith.constant 0 : index
    %c0_96 = arith.constant 0 : index
    %186 = vector.load %arg4[%c18_94, %c0_95, %c0_96] : memref<24x32x1xf32, #tpu.memory_space<vmem>>, vector<1x32x1xf32>
    %187 = vector.shape_cast %186 : vector<1x32x1xf32> to vector<32x1xf32>
    %188 = vector.broadcast %187 : vector<32x1xf32> to vector<32x128xf32>
    %189 = vector.broadcast %185 : vector<1x128xf32> to vector<32x128xf32>
    %190 = arith.mulf %188, %189 : vector<32x128xf32>
    %191 = arith.addf %181, %190 : vector<32x128xf32>
    %c6_i32 = arith.constant 6 : i32
    %192 = tpu.dynamic_rotate %0 by %c6_i32 dim 1 : vector<1x128xf32>, i32 -> vector<1x128xf32>
    %c19 = arith.constant 19 : index
    %c0_97 = arith.constant 0 : index
    %c0_98 = arith.constant 0 : index
    %193 = vector.load %arg2[%c19, %c0_97, %c0_98] : memref<24x1x128xf32, #tpu.memory_space<vmem>>, vector<1x1x128xf32>
    %194 = vector.shape_cast %193 : vector<1x1x128xf32> to vector<1x128xf32>
    %195 = arith.mulf %192, %194 : vector<1x128xf32>
    %c19_99 = arith.constant 19 : index
    %c0_100 = arith.constant 0 : index
    %c0_101 = arith.constant 0 : index
    %196 = vector.load %arg4[%c19_99, %c0_100, %c0_101] : memref<24x32x1xf32, #tpu.memory_space<vmem>>, vector<1x32x1xf32>
    %197 = vector.shape_cast %196 : vector<1x32x1xf32> to vector<32x1xf32>
    %198 = vector.broadcast %197 : vector<32x1xf32> to vector<32x128xf32>
    %199 = vector.broadcast %195 : vector<1x128xf32> to vector<32x128xf32>
    %200 = arith.mulf %198, %199 : vector<32x128xf32>
    %201 = arith.addf %191, %200 : vector<32x128xf32>
    %c5_i32 = arith.constant 5 : i32
    %202 = tpu.dynamic_rotate %0 by %c5_i32 dim 1 : vector<1x128xf32>, i32 -> vector<1x128xf32>
    %c20 = arith.constant 20 : index
    %c0_102 = arith.constant 0 : index
    %c0_103 = arith.constant 0 : index
    %203 = vector.load %arg2[%c20, %c0_102, %c0_103] : memref<24x1x128xf32, #tpu.memory_space<vmem>>, vector<1x1x128xf32>
    %204 = vector.shape_cast %203 : vector<1x1x128xf32> to vector<1x128xf32>
    %205 = arith.mulf %202, %204 : vector<1x128xf32>
    %c20_104 = arith.constant 20 : index
    %c0_105 = arith.constant 0 : index
    %c0_106 = arith.constant 0 : index
    %206 = vector.load %arg4[%c20_104, %c0_105, %c0_106] : memref<24x32x1xf32, #tpu.memory_space<vmem>>, vector<1x32x1xf32>
    %207 = vector.shape_cast %206 : vector<1x32x1xf32> to vector<32x1xf32>
    %208 = vector.broadcast %207 : vector<32x1xf32> to vector<32x128xf32>
    %209 = vector.broadcast %205 : vector<1x128xf32> to vector<32x128xf32>
    %210 = arith.mulf %208, %209 : vector<32x128xf32>
    %211 = arith.addf %201, %210 : vector<32x128xf32>
    %c3_i32 = arith.constant 3 : i32
    %212 = tpu.dynamic_rotate %0 by %c3_i32 dim 1 : vector<1x128xf32>, i32 -> vector<1x128xf32>
    %c21 = arith.constant 21 : index
    %c0_107 = arith.constant 0 : index
    %c0_108 = arith.constant 0 : index
    %213 = vector.load %arg2[%c21, %c0_107, %c0_108] : memref<24x1x128xf32, #tpu.memory_space<vmem>>, vector<1x1x128xf32>
    %214 = vector.shape_cast %213 : vector<1x1x128xf32> to vector<1x128xf32>
    %215 = arith.mulf %212, %214 : vector<1x128xf32>
    %c21_109 = arith.constant 21 : index
    %c0_110 = arith.constant 0 : index
    %c0_111 = arith.constant 0 : index
    %216 = vector.load %arg4[%c21_109, %c0_110, %c0_111] : memref<24x32x1xf32, #tpu.memory_space<vmem>>, vector<1x32x1xf32>
    %217 = vector.shape_cast %216 : vector<1x32x1xf32> to vector<32x1xf32>
    %218 = vector.broadcast %217 : vector<32x1xf32> to vector<32x128xf32>
    %219 = vector.broadcast %215 : vector<1x128xf32> to vector<32x128xf32>
    %220 = arith.mulf %218, %219 : vector<32x128xf32>
    %221 = arith.addf %211, %220 : vector<32x128xf32>
    %c2_i32 = arith.constant 2 : i32
    %222 = tpu.dynamic_rotate %0 by %c2_i32 dim 1 : vector<1x128xf32>, i32 -> vector<1x128xf32>
    %c22 = arith.constant 22 : index
    %c0_112 = arith.constant 0 : index
    %c0_113 = arith.constant 0 : index
    %223 = vector.load %arg2[%c22, %c0_112, %c0_113] : memref<24x1x128xf32, #tpu.memory_space<vmem>>, vector<1x1x128xf32>
    %224 = vector.shape_cast %223 : vector<1x1x128xf32> to vector<1x128xf32>
    %225 = arith.mulf %222, %224 : vector<1x128xf32>
    %c22_114 = arith.constant 22 : index
    %c0_115 = arith.constant 0 : index
    %c0_116 = arith.constant 0 : index
    %226 = vector.load %arg4[%c22_114, %c0_115, %c0_116] : memref<24x32x1xf32, #tpu.memory_space<vmem>>, vector<1x32x1xf32>
    %227 = vector.shape_cast %226 : vector<1x32x1xf32> to vector<32x1xf32>
    %228 = vector.broadcast %227 : vector<32x1xf32> to vector<32x128xf32>
    %229 = vector.broadcast %225 : vector<1x128xf32> to vector<32x128xf32>
    %230 = arith.mulf %228, %229 : vector<32x128xf32>
    %231 = arith.addf %221, %230 : vector<32x128xf32>
    %c1_i32 = arith.constant 1 : i32
    %232 = tpu.dynamic_rotate %0 by %c1_i32 dim 1 : vector<1x128xf32>, i32 -> vector<1x128xf32>
    %c23 = arith.constant 23 : index
    %c0_117 = arith.constant 0 : index
    %c0_118 = arith.constant 0 : index
    %233 = vector.load %arg2[%c23, %c0_117, %c0_118] : memref<24x1x128xf32, #tpu.memory_space<vmem>>, vector<1x1x128xf32>
    %234 = vector.shape_cast %233 : vector<1x1x128xf32> to vector<1x128xf32>
    %235 = arith.mulf %232, %234 : vector<1x128xf32>
    %c23_119 = arith.constant 23 : index
    %c0_120 = arith.constant 0 : index
    %c0_121 = arith.constant 0 : index
    %236 = vector.load %arg4[%c23_119, %c0_120, %c0_121] : memref<24x32x1xf32, #tpu.memory_space<vmem>>, vector<1x32x1xf32>
    %237 = vector.shape_cast %236 : vector<1x32x1xf32> to vector<32x1xf32>
    %238 = vector.broadcast %237 : vector<32x1xf32> to vector<32x128xf32>
    %239 = vector.broadcast %235 : vector<1x128xf32> to vector<32x128xf32>
    %240 = arith.mulf %238, %239 : vector<32x128xf32>
    %241 = arith.addf %231, %240 : vector<32x128xf32>
    %c0_122 = arith.constant 0 : index
    %c0_123 = arith.constant 0 : index
    %242 = vector.load %arg5[%c0_122, %c0_123] : memref<32x1xf32, #tpu.memory_space<vmem>>, vector<32x1xf32>
    %243 = vector.broadcast %242 : vector<32x1xf32> to vector<32x128xf32>
    %244 = arith.addf %241, %243 : vector<32x128xf32>
    %c0_124 = arith.constant 0 : index
    %c0_125 = arith.constant 0 : index
    %c0_126 = arith.constant 0 : index
    %245 = vector.load %arg6[%c0_124, %c0_125, %c0_126] : memref<1x16x32xf32, #tpu.memory_space<vmem>>, vector<1x16x32xf32>
    %246 = vector.shape_cast %245 : vector<1x16x32xf32> to vector<16x32xf32>
    %cst_127 = arith.constant 0.000000e+00 : f32
    %247 = vector.broadcast %cst_127 : f32 to vector<32x128xf32>
    %248 = arith.maximumf %244, %247 : vector<32x128xf32>
    %cst_128 = arith.constant dense<0.000000e+00> : vector<16x128xf32>
    %249 = tpu.matmul %246, %248, %cst_128 {dimension_numbers = #tpu.dot_dimension_numbers<[1], [0], [0], [1], [0, 0, 1, 1], [], []>} : vector<16x32xf32>, vector<32x128xf32>, vector<16x128xf32> -> vector<16x128xf32>
    %c0_129 = arith.constant 0 : index
    %c0_130 = arith.constant 0 : index
    %c0_131 = arith.constant 0 : index
    %250 = vector.load %arg7[%c0_129, %c0_130, %c0_131] : memref<1x16x1xf32, #tpu.memory_space<vmem>>, vector<1x16x1xf32>
    %251 = vector.shape_cast %250 : vector<1x16x1xf32> to vector<16x1xf32>
    %252 = vector.broadcast %251 : vector<16x1xf32> to vector<16x128xf32>
    %253 = arith.addf %249, %252 : vector<16x128xf32>
    %cst_132 = arith.constant 0.000000e+00 : f32
    %254 = vector.broadcast %cst_132 : f32 to vector<16x128xf32>
    %255 = arith.maximumf %253, %254 : vector<16x128xf32>
    %c9_i32_133 = arith.constant 9 : i32
    %256 = tpu.dynamic_rotate %255 by %c9_i32_133 dim 1 : vector<16x128xf32>, i32 -> vector<16x128xf32>
    %c0_134 = arith.constant 0 : index
    %c0_135 = arith.constant 0 : index
    %c0_136 = arith.constant 0 : index
    %257 = vector.load %arg3[%c0_134, %c0_135, %c0_136] : memref<5x1x128xf32, #tpu.memory_space<vmem>>, vector<1x1x128xf32>
    %258 = vector.shape_cast %257 : vector<1x1x128xf32> to vector<1x128xf32>
    %259 = vector.broadcast %258 : vector<1x128xf32> to vector<16x128xf32>
    %260 = arith.mulf %256, %259 : vector<16x128xf32>
    %c8_i32_137 = arith.constant 8 : i32
    %261 = tpu.dynamic_rotate %255 by %c8_i32_137 dim 1 : vector<16x128xf32>, i32 -> vector<16x128xf32>
    %c1_138 = arith.constant 1 : index
    %c0_139 = arith.constant 0 : index
    %c0_140 = arith.constant 0 : index
    %262 = vector.load %arg3[%c1_138, %c0_139, %c0_140] : memref<5x1x128xf32, #tpu.memory_space<vmem>>, vector<1x1x128xf32>
    %263 = vector.shape_cast %262 : vector<1x1x128xf32> to vector<1x128xf32>
    %264 = vector.broadcast %263 : vector<1x128xf32> to vector<16x128xf32>
    %265 = arith.mulf %261, %264 : vector<16x128xf32>
    %c7_i32_141 = arith.constant 7 : i32
    %266 = tpu.dynamic_rotate %255 by %c7_i32_141 dim 1 : vector<16x128xf32>, i32 -> vector<16x128xf32>
    %c2_142 = arith.constant 2 : index
    %c0_143 = arith.constant 0 : index
    %c0_144 = arith.constant 0 : index
    %267 = vector.load %arg3[%c2_142, %c0_143, %c0_144] : memref<5x1x128xf32, #tpu.memory_space<vmem>>, vector<1x1x128xf32>
    %268 = vector.shape_cast %267 : vector<1x1x128xf32> to vector<1x128xf32>
    %269 = vector.broadcast %268 : vector<1x128xf32> to vector<16x128xf32>
    %270 = arith.mulf %266, %269 : vector<16x128xf32>
    %c1_i32_145 = arith.constant 1 : i32
    %271 = tpu.dynamic_rotate %255 by %c1_i32_145 dim 1 : vector<16x128xf32>, i32 -> vector<16x128xf32>
    %c3_146 = arith.constant 3 : index
    %c0_147 = arith.constant 0 : index
    %c0_148 = arith.constant 0 : index
    %272 = vector.load %arg3[%c3_146, %c0_147, %c0_148] : memref<5x1x128xf32, #tpu.memory_space<vmem>>, vector<1x1x128xf32>
    %273 = vector.shape_cast %272 : vector<1x1x128xf32> to vector<1x128xf32>
    %274 = vector.broadcast %273 : vector<1x128xf32> to vector<16x128xf32>
    %275 = arith.mulf %271, %274 : vector<16x128xf32>
    %276 = tpu.concatenate %260, %265, %270, %275, %255 in 0 : vector<16x128xf32>, vector<16x128xf32>, vector<16x128xf32>, vector<16x128xf32>, vector<16x128xf32> -> vector<80x128xf32>
    %c0_149 = arith.constant 0 : index
    %c0_150 = arith.constant 0 : index
    %c0_151 = arith.constant 0 : index
    %277 = vector.load %arg8[%c0_149, %c0_150, %c0_151] : memref<1x16x80xf32, #tpu.memory_space<vmem>>, vector<1x16x80xf32>
    %278 = vector.shape_cast %277 : vector<1x16x80xf32> to vector<16x80xf32>
    %cst_152 = arith.constant dense<0.000000e+00> : vector<16x128xf32>
    %279 = tpu.matmul %278, %276, %cst_152 {dimension_numbers = #tpu.dot_dimension_numbers<[1], [0], [0], [1], [0, 0, 1, 1], [], []>} : vector<16x80xf32>, vector<80x128xf32>, vector<16x128xf32> -> vector<16x128xf32>
    %c0_153 = arith.constant 0 : index
    %c0_154 = arith.constant 0 : index
    %c0_155 = arith.constant 0 : index
    %280 = vector.load %arg9[%c0_153, %c0_154, %c0_155] : memref<1x16x1xf32, #tpu.memory_space<vmem>>, vector<1x16x1xf32>
    %281 = vector.shape_cast %280 : vector<1x16x1xf32> to vector<16x1xf32>
    %282 = vector.broadcast %281 : vector<16x1xf32> to vector<16x128xf32>
    %283 = arith.addf %279, %282 : vector<16x128xf32>
    %c0_156 = arith.constant 0 : index
    %c0_157 = arith.constant 0 : index
    %c0_158 = arith.constant 0 : index
    %284 = vector.load %arg10[%c0_156, %c0_157, %c0_158] : memref<1x32x16xf32, #tpu.memory_space<vmem>>, vector<1x32x16xf32>
    %285 = vector.shape_cast %284 : vector<1x32x16xf32> to vector<32x16xf32>
    %cst_159 = arith.constant 0.000000e+00 : f32
    %286 = vector.broadcast %cst_159 : f32 to vector<16x128xf32>
    %287 = arith.maximumf %283, %286 : vector<16x128xf32>
    %cst_160 = arith.constant dense<0.000000e+00> : vector<32x128xf32>
    %288 = tpu.matmul %285, %287, %cst_160 {dimension_numbers = #tpu.dot_dimension_numbers<[1], [0], [0], [1], [0, 0, 1, 1], [], []>} : vector<32x16xf32>, vector<16x128xf32>, vector<32x128xf32> -> vector<32x128xf32>
    %c0_161 = arith.constant 0 : index
    %c0_162 = arith.constant 0 : index
    %c0_163 = arith.constant 0 : index
    %289 = vector.load %arg11[%c0_161, %c0_162, %c0_163] : memref<1x32x1xf32, #tpu.memory_space<vmem>>, vector<1x32x1xf32>
    %290 = vector.shape_cast %289 : vector<1x32x1xf32> to vector<32x1xf32>
    %291 = vector.broadcast %290 : vector<32x1xf32> to vector<32x128xf32>
    %292 = arith.addf %288, %291 : vector<32x128xf32>
    %cst_164 = arith.constant 2.000000e+00 : f32
    %293 = vector.broadcast %cst_164 : f32 to vector<32x128xf32>
    %294 = arith.mulf %293, %244 : vector<32x128xf32>
    %295 = arith.addf %294, %292 : vector<32x128xf32>
    %c0_165 = arith.constant 0 : index
    %c0_166 = arith.constant 0 : index
    %296 = vector.load %arg12[%c0_165, %c0_166] : memref<32x1xf32, #tpu.memory_space<vmem>>, vector<32x1xf32>
    %cst_167 = arith.constant 0.000000e+00 : f32
    %297 = vector.broadcast %cst_167 : f32 to vector<32x128xf32>
    %298 = arith.maximumf %295, %297 : vector<32x128xf32>
    %299 = vector.broadcast %296 : vector<32x1xf32> to vector<32x128xf32>
    %300 = arith.mulf %299, %298 : vector<32x128xf32>
    %cst_168 = arith.constant dense<0.000000e+00> : vector<128xf32>
    %301 = vector.multi_reduction <add>, %300, %cst_168 [0] : vector<32x128xf32> to vector<128xf32>
    %302 = vector.shape_cast %301 : vector<128xf32> to vector<1x128xf32>
    %c0_169 = arith.constant 0 : index
    %c0_170 = arith.constant 0 : index
    %303 = vector.load %arg13[%c0_169, %c0_170] : memref<1x1xf32, #tpu.memory_space<vmem>>, vector<1x1xf32>
    %304 = vector.broadcast %303 : vector<1x1xf32> to vector<1x128xf32>
    %305 = arith.addf %302, %304 : vector<1x128xf32>
    %c0_171 = arith.constant 0 : index
    %c0_172 = arith.constant 0 : index
    %306 = vector.load %arg14[%c0_171, %c0_172] : memref<1x128xf32, #tpu.memory_space<vmem>>, vector<1x128xf32>
    tpu.vector_store %arg14[%c0_171, %c0_172], %305 {strides = array<i32>} : memref<1x128xf32, #tpu.memory_space<vmem>>, vector<1x128xf32>,
    return
  }
  func.func @transform_0(%arg0: i32) -> (i32, i32) {
    %c0_i32 = arith.constant 0 : i32
    %c0_i32_0 = arith.constant 0 : i32
    return %c0_i32, %arg0 : i32, i32
  }
  func.func @transform_1(%arg0: i32) -> (i32, i32, i32) {
    %c0_i32 = arith.constant 0 : i32
    %c0_i32_0 = arith.constant 0 : i32
    %c0_i32_1 = arith.constant 0 : i32
    %c0_i32_2 = arith.constant 0 : i32
    return %c0_i32, %c0_i32_0, %c0_i32_1 : i32, i32, i32
  }
  func.func @transform_2(%arg0: i32) -> (i32, i32, i32) {
    %c0_i32 = arith.constant 0 : i32
    %c0_i32_0 = arith.constant 0 : i32
    %c0_i32_1 = arith.constant 0 : i32
    %c0_i32_2 = arith.constant 0 : i32
    return %c0_i32, %c0_i32_0, %c0_i32_1 : i32, i32, i32
  }
  func.func @transform_3(%arg0: i32) -> (i32, i32, i32) {
    %c0_i32 = arith.constant 0 : i32
    %c0_i32_0 = arith.constant 0 : i32
    %c0_i32_1 = arith.constant 0 : i32
    %c0_i32_2 = arith.constant 0 : i32
    return %c0_i32, %c0_i32_0, %c0_i32_1 : i32, i32, i32
  }
  func.func @transform_4(%arg0: i32) -> (i32, i32) {
    %c0_i32 = arith.constant 0 : i32
    %c0_i32_0 = arith.constant 0 : i32
    %c0_i32_1 = arith.constant 0 : i32
    return %c0_i32, %c0_i32_0 : i32, i32
  }
  func.func @transform_5(%arg0: i32) -> (i32, i32, i32) {
    %c0_i32 = arith.constant 0 : i32
    %c0_i32_0 = arith.constant 0 : i32
    %c0_i32_1 = arith.constant 0 : i32
    %c0_i32_2 = arith.constant 0 : i32
    return %c0_i32, %c0_i32_0, %c0_i32_1 : i32, i32, i32
  }
  func.func @transform_6(%arg0: i32) -> (i32, i32, i32) {
    %c0_i32 = arith.constant 0 : i32
    %c0_i32_0 = arith.constant 0 : i32
    %c0_i32_1 = arith.constant 0 : i32
    %c0_i32_2 = arith.constant 0 : i32
    return %c0_i32, %c0_i32_0, %c0_i32_1 : i32, i32, i32
  }
  func.func @transform_7(%arg0: i32) -> (i32, i32, i32) {
    %c0_i32 = arith.constant 0 : i32
    %c0_i32_0 = arith.constant 0 : i32
    %c0_i32_1 = arith.constant 0 : i32
    %c0_i32_2 = arith.constant 0 : i32
    return %c0_i32, %c0_i32_0, %c0_i32_1 : i32, i32, i32
  }
  func.func @transform_8(%arg0: i32) -> (i32, i32, i32) {
    %c0_i32 = arith.constant 0 : i32
    %c0_i32_0 = arith.constant 0 : i32
    %c0_i32_1 = arith.constant 0 : i32
    %c0_i32_2 = arith.constant 0 : i32
    return %c0_i32, %c0_i32_0, %c0_i32_1 : i32, i32, i32
  }
  func.func @transform_9(%arg0: i32) -> (i32, i32, i32) {
    %c0_i32 = arith.constant 0 : i32
    %c0_i32_0 = arith.constant 0 : i32
    %c0_i32_1 = arith.constant 0 : i32
    %c0_i32_2 = arith.constant 0 : i32
    return %c0_i32, %c0_i32_0, %c0_i32_1 : i32, i32, i32
  }
  func.func @transform_10(%arg0: i32) -> (i32, i32, i32) {
    %c0_i32 = arith.constant 0 : i32
    %c0_i32_0 = arith.constant 0 : i32
    %c0_i32_1 = arith.constant 0 : i32
    %c0_i32_2 = arith.constant 0 : i32
    return %c0_i32, %c0_i32_0, %c0_i32_1 : i32, i32, i32
  }
  func.func @transform_11(%arg0: i32) -> (i32, i32) {
    %c0_i32 = arith.constant 0 : i32
    %c0_i32_0 = arith.constant 0 : i32
    %c0_i32_1 = arith.constant 0 : i32
    return %c0_i32, %c0_i32_0 : i32, i32
  }
  func.func @transform_12(%arg0: i32) -> (i32, i32) {
    %c0_i32 = arith.constant 0 : i32
    %c0_i32_0 = arith.constant 0 : i32
    %c0_i32_1 = arith.constant 0 : i32
    return %c0_i32, %c0_i32_0 : i32, i32
  }
  func.func @transform_13(%arg0: i32) -> (i32, i32) {
    %c0_i32 = arith.constant 0 : i32
    %c0_i32_0 = arith.constant 0 : i32
    return %c0_i32, %arg0 : i32, i32
  }
}

</mosaic_0001>

<bundles_post_ra>
// kernel: pixelcnn_forward_pallas.1
= control target key start
LH: loop header
LB: loop body
LE: loop exit
PB: predicated region body
PF: predicated region fallthrough
CT: control target
= control target key end

     0   :  { %v1448_v0 = vmov 0   ;;  %s1449_s14 = smov 27   ;;  %s1450_s19 = smov 26   ;;  %vm1027_vm0 = vcmask 261120   ;;  %vm1116_vm1 = vcmask 654336   ;;  %vm1176_vm2 = vcmask 130048   ;;  %s2107_s3 = inlined_call_operand.vmem [shape: f32[24,32,1], index: 3, kind: input, shape index: {}]   ;;  %s2108_s0 = inlined_call_operand.vmem [shape: f32[1,128], index: 0, kind: input, shape index: {}]   ;;  %s2109_s1 = inlined_call_operand.vmem [shape: f32[24,1,128], index: 1, kind: input, shape index: {}]   ;;  %s2110_s4 = inlined_call_operand.vmem [shape: f32[32,1], index: 4, kind: input, shape index: {}]   ;;  %s2111_s6 = inlined_call_operand.vmem [shape: f32[1,16,1], index: 6, kind: input, shape index: {}]   ;;  %s2112_s5 = inlined_call_operand.vmem [shape: f32[1,16,32], index: 5, kind: input, shape index: {}]   ;;  %s2113_s2 = inlined_call_operand.vmem [shape: f32[5,1,128], index: 2, kind: input, shape index: {}]   ;;  %s2114_s12 = inlined_call_operand.<no memory space> [shape: f32[1,1], index: 12, kind: input, shape index: {}]   ;;  %s2115_s8 = inlined_call_operand.vmem [shape: f32[1,16,1], index: 8, kind: input, shape index: {}]   ;;  %s2116_s10 = inlined_call_operand.vmem [shape: f32[1,32,1], index: 10, kind: input, shape index: {}]   ;;  %s2117_s11 = inlined_call_operand.vmem [shape: f32[32,1], index: 11, kind: input, shape index: {}]   ;;  %s2118_s7 = inlined_call_operand.vmem [shape: f32[1,16,80], index: 7, kind: input, shape index: {}]   ;;  %s2119_s9 = inlined_call_operand.vmem [shape: f32[1,32,16], index: 9, kind: input, shape index: {}]   ;;  %s2120_s13 = inlined_call_operand.vmem [shape: f32[1,128], index: 13, kind: output, shape index: {}]  }
   0x1   :  { %1443 = vset.pattern.permute.xlu2 %v1448_v0  ;;  %1442 = vset.pattern.permute.xlu1 %v1448_v0  ;;  %v54_v1 = vld [vmem:[%s2107_s3 + $0x18] sm:$0xff]  ;;  %v52_v2 = vld [vmem:[%s2107_s3 + $0x8] sm:$0xff]  ;;  %v1552_v3 = vld [vmem:[%s2108_s0] sm:$0x1]  ;;  %s1451_s29 = smov 25   ;;  %s1452_s22 = smov 24  }
   0x2   :  { %72 = vperm.xlu2 %1443, %v54_v1   ;;  %62 = vperm.xlu1 %1442, %v52_v2   ;;  %v53_v4 = vld [vmem:[%s2107_s3 + $0x10] sm:$0xff]  ;;  %v51_v5 = vld [vmem:[%s2107_s3] sm:$0xff]  ;;  %v1282_v7 = vld [vmem:[%s2107_s3 + $0x28] sm:$0xff]  ;;  %s1453_s27 = smov 23   ;;  %s1454_s20 = smov 22  }
   0x3   :  { %47 = vrot.lane.b32.xlu0 %v1552_v3, %s1449_s14  ;;  %v1281_v6 = vld [vmem:[%s2107_s3 + $0x20] sm:$0xff]  ;;  %v1283_v8 = vld [vmem:[%s2107_s3 + $0x30] sm:$0xff]  ;;  %v1284_v9 = vld [vmem:[%s2107_s3 + $0x38] sm:$0xff]  ;;  %s1456_s30 = smov 19   ;;  %s1457_s18 = smov 18  }
   0x4   :  { %1441 = vset.pattern.permute.xlu0 %v1448_v0  ;;  %v1286_v10 = vld [vmem:[%s2107_s3 + $0x40] sm:$0xff]  ;;  %v1287_v11 = vld [vmem:[%s2107_s3 + $0x48] sm:$0xff]  ;;  %v1288_v12 = vld [vmem:[%s2107_s3 + $0x50] sm:$0xff]  ;;  %s1460_s26 = smov 15   ;;  %s1461_s14 = smov 14  }
   0x5   :  { %v1289_v13 = vld [vmem:[%s2107_s3 + $0x58] sm:$0xff]  ;;  %v1291_v14 = vld [vmem:[%s2107_s3 + $0x60] sm:$0xff]  ;;  %v1292_v15 = vld [vmem:[%s2107_s3 + $0x68] sm:$0xff]  ;;  %s1462_s24 = smov 13   ;;  %s1463_s21 = smov 11  }
   0x6   :  { %v1293_v16 = vld [vmem:[%s2107_s3 + $0x70] sm:$0xff]  ;;  %v1294_v17 = vld [vmem:[%s2107_s3 + $0x78] sm:$0xff]  ;;  %v1296_v18 = vld [vmem:[%s2107_s3 + $0x80] sm:$0xff]  ;;  %s1464_s28 = smov 10   ;;  %s1465_s23 = smov 9  }
   0x7   :  { %v1297_v19 = vld [vmem:[%s2107_s3 + $0x88] sm:$0xff]  ;;  %v1298_v20 = vld [vmem:[%s2107_s3 + $0x90] sm:$0xff]  ;;  %v1299_v21 = vld [vmem:[%s2107_s3 + $0x98] sm:$0xff]  ;;  %s1468_s25 = smov 6  }
   0x8   :  { %v1301_v22 = vld [vmem:[%s2107_s3 + $0xa0] sm:$0xff]  ;;  %v1302_v23 = vld [vmem:[%s2107_s3 + $0xa8] sm:$0xff]  ;;  %v1303_v24 = vld [vmem:[%s2107_s3 + $0xb0] sm:$0xff] }
   0x9   :  { %v1304_v25 = vld [vmem:[%s2107_s3 + $0xb8] sm:$0xff]  ;;  %v1306_v26 = vld [vmem:[%s2107_s3 + $0xc0] sm:$0xff]  ;;  %v1308_v28 = vld [vmem:[%s2107_s3 + $0xd0] sm:$0xff] }
   0xa   :  { %67 = vperm.xlu1 %1442, %v53_v4   ;;  %84 = vrot.lane.b32.xlu2 %v1552_v3, %s1450_s19  ;;  %v1309_v27 = vld [vmem:[%s2107_s3 + $0xd8] sm:$0xff]  ;;  %v1307_v31 = vld [vmem:[%s2107_s3 + $0xc8] sm:$0xff]  ;;  %v1280_v32 = vld [vmem:[%s2109_s1 + $0x1] sm:$0x1]  ;;  %s1466_s19 = smov 8  }
   0xb   :  { %57 = vperm.xlu0 %1441, %v51_v5   ;;  %v1314_v30 = vld [vmem:[%s2107_s3 + $0xf8] sm:$0xff]  ;;  %v1313_v35 = vld [vmem:[%s2107_s3 + $0xf0] sm:$0xff]  ;;  %v1312_v40 = vld [vmem:[%s2107_s3 + $0xe8] sm:$0xff] }
   0xc   :  { %v1319_v36 = vld [vmem:[%s2107_s3 + $0x118] sm:$0xff]  ;;  %v1318_v41 = vld [vmem:[%s2107_s3 + $0x110] sm:$0xff]  ;;  %v1285_v43 = vld [vmem:[%s2109_s1 + $0x2] sm:$0x1] }
   0xd   :  { %v1324_v42 = vld [vmem:[%s2107_s3 + $0x138] sm:$0xff]  ;;  %v49_v44 = vld [vmem:[%s2109_s1] sm:$0x1]  ;;  %v1317_v52 = vld [vmem:[%s2107_s3 + $0x108] sm:$0xff] }
   0xe   :  { %v1311_v50 = vld [vmem:[%s2107_s3 + $0xe0] sm:$0xff]  ;;  %v1323_v63 = vld [vmem:[%s2107_s3 + $0x130] sm:$0xff]  ;;  %v1329_v0 = vld [vmem:[%s2107_s3 + $0x158] sm:$0xff] }
  0x12   :  { %96 = vperm.xlu1 %1442, %v1281_v6   ;;  %101 = vperm.xlu2 %1443, %v1282_v7  }
  0x13   :  { %106 = vperm.xlu0 %1441, %v1283_v8   ;;  %v1316_v8 = vld [vmem:[%s2107_s3 + $0x100] sm:$0xff] }
  0x1a   :  { %111 = vperm.xlu1 %1442, %v1284_v9   ;;  %123 = vrot.lane.b32.xlu2 %v1552_v3, %s1451_s29  ;;  %s1455_s29 = smov 21   ;;  %v1322_v9 = vld [vmem:[%s2107_s3 + $0x128] sm:$0xff] }
  0x1b   :  { %135 = vperm.xlu0 %1441, %v1286_v10  }
  0x22   :  { %140 = vperm.xlu1 %1442, %v1287_v11   ;;  %145 = vperm.xlu2 %1443, %v1288_v12   ;;  %v1328_v11 = vld [vmem:[%s2107_s3 + $0x150] sm:$0xff] }
  0x23   :  { %150 = vperm.xlu0 %1441, %v1289_v13  }
  0x2a   :  { %162 = vrot.lane.b32.xlu1 %v1552_v3, %s1452_s22  ;;  %174 = vperm.xlu2 %1443, %v1291_v14   ;;  %s1458_s22 = smov 17  }
  0x2b   :  { %179 = vperm.xlu0 %1441, %v1292_v15  }
  0x32   :  { %184 = vperm.xlu1 %1442, %v1293_v16   ;;  %189 = vperm.xlu2 %1443, %v1294_v17  }
  0x33   :  { %201 = vrot.lane.b32.xlu0 %v1552_v3, %s1453_s27  ;;  %s1472_s27 = smov 1  }
  0x3a   :  { %213 = vperm.xlu1 %1442, %v1296_v18   ;;  %218 = vperm.xlu2 %1443, %v1297_v19   ;;  %v1334_v19 = vld [vmem:[%s2107_s3 + $0x178] sm:$0xff] }
  0x3b   :  { %223 = vperm.xlu0 %1441, %v1298_v20  }
  0x42   :  { %228 = vperm.xlu1 %1442, %v1299_v21   ;;  %240 = vrot.lane.b32.xlu2 %v1552_v3, %s1454_s20  ;;  %v1321_v21 = vld [vmem:[%s2107_s3 + $0x120] sm:$0xff] }
  0x43   :  { %252 = vperm.xlu0 %1441, %v1301_v22  }
  0x4a   :  { %257 = vperm.xlu1 %1442, %v1302_v23   ;;  %262 = vperm.xlu2 %1443, %v1303_v24  }
  0x4b   :  { %267 = vperm.xlu0 %1441, %v1304_v25  }
  0x52   :  { %279 = vrot.lane.b32.xlu1 %v1552_v3, %s1455_s29  ;;  %291 = vperm.xlu2 %1443, %v1306_v26   ;;  %s1459_s29 = smov 16  }
  0x53   :  { %318 = vrot.lane.b32.xlu0 %v1552_v3, %s1456_s30 }
  0x5a   :  { %306 = vperm.xlu1 %1442, %v1309_v27   ;;  %357 = vrot.lane.b32.xlu2 %v1552_v3, %s1457_s18 }
  0x5b   :  { %301 = vperm.xlu0 %1441, %v1308_v28   ;;  %v1327_v28 = vld [vmem:[%s2107_s3 + $0x148] sm:$0xff] }
  0x5c   :  { %v73_v29 = vpop.permute.xlu2 %72 }
  0x62   :  { %345 = vperm.xlu1 %1442, %v1314_v30   ;;  %396 = vrot.lane.b32.xlu2 %v1552_v3, %s1458_s22  ;;  %s1469_s22 = smov 5  }
  0x63   :  { %296 = vperm.xlu0 %1441, %v1307_v31   ;;  %v1339_v31 = vld [vmem:[%s2107_s3 + $0x198] sm:$0xff] }
  0x64   :  { %v85_v33 = vpop.permute.xlu2 %84 }
  0x65   :  { %v88_v34 = vmul.f32 %v1280_v32, %v85_v33  ;;  %v1290_v32 = vld [vmem:[%s2109_s1 + $0x3] sm:$0x1]  ;;  %v1300_v33 = vld [vmem:[%s2109_s1 + $0x5] sm:$0x1] }
  0x67   :  { %v114_v37 = vperm.slane %v88_v34, 0 }
  0x6a   :  { %340 = vperm.xlu1 %1442, %v1313_v35   ;;  %384 = vperm.xlu2 %1443, %v1319_v36  }
  0x6b   :  { %435 = vrot.lane.b32.xlu0 %v1552_v3, %s1459_s29  ;;  %s1471_s29 = smov 2  }
  0x6c   :  { %v102_v38 = vpop.permute.xlu2 %101 }
  0x6d   :  { %v116_v39 = vmul.f32 %v114_v37, %v102_v38 }
  0x72   :  { %335 = vperm.xlu1 %1442, %v1312_v40   ;;  %379 = vperm.xlu2 %1443, %v1318_v41   ;;  %v1326_v40 = vld [vmem:[%s2107_s3 + $0x140] sm:$0xff]  ;;  %v1332_v41 = vld [vmem:[%s2107_s3 + $0x168] sm:$0xff] }
  0x73   :  { %423 = vperm.xlu0 %1441, %v1324_v42  }
  0x74   :  { %v63_v45 = vpop.permute.xlu1 %62  ;;  %v124_v46 = vpop.permute.xlu2 %123 }
  0x75   :  { %v127_v47 = vmul.f32 %v1285_v43, %v124_v46  ;;  %v48_v48 = vpop.permute.xlu0 %47 }
  0x76   :  { %v50_v49 = vmul.f32 %v49_v44, %v48_v48 }
  0x77   :  { %v153_v53 = vperm.slane %v127_v47, 0  ;;  %v1295_v47 = vld [vmem:[%s2109_s1 + $0x4] sm:$0x1] }
  0x78   :  { %v75_v51 = vperm.slane %v50_v49, 0 }
  0x7a   :  { %474 = vrot.lane.b32.xlu1 %v1552_v3, %s1460_s26  ;;  %330 = vperm.xlu2 %1443, %v1311_v50   ;;  %v79_v54 = vmul.f32 %v75_v51, %v73_v29  ;;  %v77_v55 = vmul.f32 %v75_v51, %v63_v45  ;;  %v1333_v29 = vld [vmem:[%s2107_s3 + $0x170] sm:$0xff]  ;;  %s1467_s26 = smov 7  }
  0x7b   :  { %374 = vperm.xlu0 %1441, %v1317_v52  }
  0x7c   :  { %v68_v56 = vpop.permute.xlu1 %67  ;;  %v146_v57 = vpop.permute.xlu2 %145  ;;  %v120_v58 = vadd.f32 %v116_v39, %v77_v55 }
  0x7d   :  { %v78_v59 = vmul.f32 %v75_v51, %v68_v56  ;;  %v156_v60 = vmul.f32 %v153_v53, %v146_v57  ;;  %v58_v61 = vpop.permute.xlu0 %57  ;;  %v1338_v57 = vld [vmem:[%s2107_s3 + $0x190] sm:$0xff] }
  0x7e   :  { %v76_v62 = vmul.f32 %v75_v51, %v58_v61 }
  0x82   :  { %418 = vperm.xlu1 %1442, %v1323_v63   ;;  %462 = vperm.xlu2 %1443, %v1329_v0  }
  0x83   :  { %513 = vrot.lane.b32.xlu0 %v1552_v3, %s1461_s14  ;;  %s1470_s14 = smov 3  }
  0x84   :  { %v97_v1 = vpop.permute.xlu1 %96  ;;  %v175_v2 = vpop.permute.xlu2 %174 }
  0x85   :  { %v115_v4 = vmul.f32 %v114_v37, %v97_v1  ;;  %v107_v5 = vpop.permute.xlu0 %106 }
  0x86   :  { %v117_v6 = vmul.f32 %v114_v37, %v107_v5  ;;  %v1331_v5 = vld [vmem:[%s2107_s3 + $0x160] sm:$0xff] }
  0x87   :  { %v119_v7 = vadd.f32 %v115_v4, %v76_v62 }
  0x88   :  { %v121_v10 = vadd.f32 %v117_v6, %v78_v59  ;;  %v1337_v6 = vld [vmem:[%s2107_s3 + $0x188] sm:$0xff] }
  0x8a   :  { %369 = vperm.xlu1 %1442, %v1316_v8   ;;  %413 = vperm.xlu2 %1443, %v1322_v9   ;;  %v160_v12 = vadd.f32 %v156_v60, %v121_v10  ;;  %v1343_v8 = vld [vmem:[%s2107_s3 + $0x1b0] sm:$0xff] }
  0x8b   :  { %457 = vperm.xlu0 %1441, %v1328_v11  }
  0x8c   :  { %v112_v13 = vpop.permute.xlu1 %111  ;;  %v190_v14 = vpop.permute.xlu2 %189 }
  0x8d   :  { %v118_v15 = vmul.f32 %v114_v37, %v112_v13  ;;  %v136_v16 = vpop.permute.xlu0 %135 }
  0x8e   :  { %v154_v17 = vmul.f32 %v153_v53, %v136_v16  ;;  %v1349_v16 = vld [vmem:[%s2107_s3 + $0x1d8] sm:$0xff] }
  0x8f   :  { %v122_v18 = vadd.f32 %v118_v15, %v79_v54 }
  0x90   :  { %v158_v20 = vadd.f32 %v154_v17, %v119_v7 }
  0x92   :  { %501 = vperm.xlu1 %1442, %v1334_v19   ;;  %552 = vrot.lane.b32.xlu2 %v1552_v3, %s1462_s24  ;;  %v1315_v19 = vld [vmem:[%s2109_s1 + $0x8] sm:$0x1] }
  0x93   :  { %408 = vperm.xlu0 %1441, %v1321_v21  }
  0x94   :  { %v141_v22 = vpop.permute.xlu1 %140  ;;  %v219_v23 = vpop.permute.xlu2 %218 }
  0x95   :  { %v155_v24 = vmul.f32 %v153_v53, %v141_v22  ;;  %v151_v25 = vpop.permute.xlu0 %150 }
  0x96   :  { %v157_v26 = vmul.f32 %v153_v53, %v151_v25 }
  0x97   :  { %v159_v27 = vadd.f32 %v155_v24, %v120_v58  ;;  %v1344_v58 = vld [vmem:[%s2107_s3 + $0x1b8] sm:$0xff] }
  0x98   :  { %v161_v30 = vadd.f32 %v157_v26, %v122_v18  ;;  %v1336_v18 = vld [vmem:[%s2107_s3 + $0x180] sm:$0xff] }
  0x9a   :  { %452 = vperm.xlu1 %1442, %v1327_v28   ;;  %496 = vperm.xlu2 %1443, %v1333_v29   ;;  %v1348_v28 = vld [vmem:[%s2107_s3 + $0x1d0] sm:$0xff] }
  0x9b   :  { %540 = vperm.xlu0 %1441, %v1339_v31  }
  0x9c   :  { %v163_v34 = vpop.permute.xlu1 %162  ;;  %v241_v35 = vpop.permute.xlu2 %240 }
  0x9d   :  { %v166_v36 = vmul.f32 %v1290_v32, %v163_v34  ;;  %v244_v37 = vmul.f32 %v1300_v33, %v241_v35  ;;  %v180_v38 = vpop.permute.xlu0 %179  ;;  %v1305_v32 = vld [vmem:[%s2109_s1 + $0x6] sm:$0x1] }
  0x9f   :  { %v192_v39 = vperm.slane %v166_v36, 0  ;;  %v270_v42 = vperm.slane %v244_v37, 0 }
  0xa1   :  { %v194_v43 = vmul.f32 %v192_v39, %v180_v38  ;;  %v193_v44 = vmul.f32 %v192_v39, %v175_v2  ;;  %v196_v45 = vmul.f32 %v192_v39, %v190_v14 }
  0xa2   :  { %591 = vrot.lane.b32.xlu1 %v1552_v3, %s1463_s21  ;;  %447 = vperm.xlu2 %1443, %v1326_v40   ;;  %v1347_v40 = vld [vmem:[%s2107_s3 + $0x1c8] sm:$0xff] }
  0xa3   :  { %v198_v46 = vadd.f32 %v194_v43, %v159_v27  ;;  %491 = vperm.xlu0 %1441, %v1332_v41   ;;  %v197_v48 = vadd.f32 %v193_v44, %v158_v20  ;;  %v200_v49 = vadd.f32 %v196_v45, %v161_v30  ;;  %v1342_v27 = vld [vmem:[%s2107_s3 + $0x1a8] sm:$0xff]  ;;  %v1354_v30 = vld [vmem:[%s2107_s3 + $0x1f8] sm:$0xff]  ;;  %v1310_v43 = vld [vmem:[%s2109_s1 + $0x7] sm:$0x1] }
  0xa4   :  { %v185_v50 = vpop.permute.xlu1 %184  ;;  %v263_v51 = vpop.permute.xlu2 %262 }
  0xa5   :  { %v195_v52 = vmul.f32 %v192_v39, %v185_v50  ;;  %v273_v53 = vmul.f32 %v270_v42, %v263_v51  ;;  %v202_v54 = vpop.permute.xlu0 %201  ;;  %v1341_v39 = vld [vmem:[%s2107_s3 + $0x1a0] sm:$0xff] }
  0xa6   :  { %v205_v55 = vmul.f32 %v1295_v47, %v202_v54 }
  0xa7   :  { %v199_v56 = vadd.f32 %v195_v52, %v160_v12  ;;  %v1353_v52 = vld [vmem:[%s2107_s3 + $0x1f0] sm:$0xff] }
  0xa8   :  { %v231_v59 = vperm.slane %v205_v55, 0 }
  0xaa   :  { %535 = vperm.xlu1 %1442, %v1338_v57   ;;  %579 = vperm.xlu2 %1443, %v1344_v58   ;;  %v233_v60 = vmul.f32 %v231_v59, %v219_v23 }
  0xab   :  { %630 = vrot.lane.b32.xlu0 %v1552_v3, %s1464_s28 }
  0xac   :  { %v214_v61 = vpop.permute.xlu1 %213  ;;  %v292_v62 = vpop.permute.xlu2 %291  ;;  %v237_v63 = vadd.f32 %v233_v60, %v198_v46 }
  0xad   :  { %v232_v0 = vmul.f32 %v231_v59, %v214_v61  ;;  %v224_v1 = vpop.permute.xlu0 %223 }
  0xae   :  { %v234_v2 = vmul.f32 %v231_v59, %v224_v1  ;;  %v1352_v1 = vld [vmem:[%s2107_s3 + $0x1e8] sm:$0xff] }
  0xaf   :  { %v236_v4 = vadd.f32 %v232_v0, %v197_v48  ;;  %v1346_v0 = vld [vmem:[%s2107_s3 + $0x1c0] sm:$0xff] }
  0xb0   :  { %v238_v7 = vadd.f32 %v234_v2, %v199_v56 }
  0xb2   :  { %486 = vperm.xlu1 %1442, %v1331_v5   ;;  %530 = vperm.xlu2 %1443, %v1337_v6   ;;  %v277_v9 = vadd.f32 %v273_v53, %v238_v7  ;;  %v1359_v53 = vld [vmem:[%s2107_s3 + $0x218] sm:$0xff]  ;;  %v1325_v6 = vld [vmem:[%s2109_s1 + $0xa] sm:$0x1]  ;;  %v1320_v7 = vld [vmem:[%s2109_s1 + $0x9] sm:$0x1] }
  0xb3   :  { %574 = vperm.xlu0 %1441, %v1343_v8  }
  0xb4   :  { %v229_v10 = vpop.permute.xlu1 %228  ;;  %v358_v11 = vpop.permute.xlu2 %357 }
  0xb5   :  { %v235_v12 = vmul.f32 %v231_v59, %v229_v10  ;;  %v253_v13 = vpop.permute.xlu0 %252  ;;  %v361_v22 = vmul.f32 %v1315_v19, %v358_v11 }
  0xb6   :  { %v271_v14 = vmul.f32 %v270_v42, %v253_v13 }
  0xb7   :  { %v239_v15 = vadd.f32 %v235_v12, %v200_v49  ;;  %v1763_v31 = vperm.slane %v361_v22, 0 }
  0xb8   :  { %v275_v17 = vadd.f32 %v271_v14, %v236_v4  ;;  %v1358_v4 = vld [vmem:[%s2107_s3 + $0x210] sm:$0xff] }
  0xba   :  { %618 = vperm.xlu1 %1442, %v1349_v16   ;;  %669 = vrot.lane.b32.xlu2 %v1552_v3, %s1465_s23 }
  0xbb   :  { %525 = vperm.xlu0 %1441, %v1336_v18  }
  0xbc   :  { %v258_v20 = vpop.permute.xlu1 %257  ;;  %v1752_v21 = vpop.permute.xlu2 %396 }
  0xbd   :  { %v272_v23 = vmul.f32 %v270_v42, %v258_v20  ;;  %v268_v24 = vpop.permute.xlu0 %267  ;;  %v400_v13 = vmul.f32 %v1320_v7, %v1752_v21 }
  0xbe   :  { %v274_v25 = vmul.f32 %v270_v42, %v268_v24 }
  0xbf   :  { %v276_v26 = vadd.f32 %v272_v23, %v237_v63  ;;  %v1817_v20 = vperm.slane %v400_v13, 0  ;;  %v1379_v13 = vld [vmem:[%s2107_s3 + $0x298] sm:$0xff] }
  0xc0   :  { %v278_v29 = vadd.f32 %v274_v25, %v239_v15  ;;  %v1364_v15 = vld [vmem:[%s2107_s3 + $0x238] sm:$0xff] }
  0xc2   :  { %569 = vperm.xlu1 %1442, %v1342_v27   ;;  %613 = vperm.xlu2 %1443, %v1348_v28   ;;  %v1357_v28 = vld [vmem:[%s2107_s3 + $0x208] sm:$0xff] }
  0xc3   :  { %657 = vperm.xlu0 %1441, %v1354_v30  }
  0xc4   :  { %v280_v33 = vpop.permute.xlu1 %279  ;;  %v385_v34 = vpop.permute.xlu2 %384 }
  0xc5   :  { %v283_v35 = vmul.f32 %v1305_v32, %v280_v33  ;;  %v391_v36 = vmul.f32 %v1763_v31, %v385_v34  ;;  %v319_v37 = vpop.permute.xlu0 %318  ;;  %v1369_v32 = vld [vmem:[%s2107_s3 + $0x258] sm:$0xff]  ;;  %v1330_v34 = vld [vmem:[%s2109_s1 + $0xb] sm:$0x1] }
  0xc6   :  { %v322_v50 = vmul.f32 %v1310_v43, %v319_v37 }
  0xc7   :  { %v309_v38 = vperm.slane %v283_v35, 0 }
  0xc8   :  { %v348_v55 = vperm.slane %v322_v50, 0 }
  0xc9   :  { %v310_v41 = vmul.f32 %v309_v38, %v292_v62 }
  0xca   :  { %708 = vrot.lane.b32.xlu1 %v1552_v3, %s1466_s19  ;;  %564 = vperm.xlu2 %1443, %v1341_v39  }
  0xcb   :  { %608 = vperm.xlu0 %1441, %v1347_v40   ;;  %v314_v42 = vadd.f32 %v310_v41, %v275_v17  ;;  %v1351_v17 = vld [vmem:[%s2107_s3 + $0x1e0] sm:$0xff] }
  0xcc   :  { %v307_v44 = vpop.permute.xlu1 %306  ;;  %v380_v45 = vpop.permute.xlu2 %379  ;;  %v1356_v40 = vld [vmem:[%s2107_s3 + $0x200] sm:$0xff] }
  0xcd   :  { %v313_v46 = vmul.f32 %v309_v38, %v307_v44  ;;  %v390_v47 = vmul.f32 %v1763_v31, %v380_v45  ;;  %v302_v48 = vpop.permute.xlu0 %301 }
  0xce   :  { %v312_v49 = vmul.f32 %v309_v38, %v302_v48 }
  0xcf   :  { %v317_v51 = vadd.f32 %v313_v46, %v278_v29  ;;  %v1363_v29 = vld [vmem:[%s2107_s3 + $0x230] sm:$0xff] }
  0xd0   :  { %v316_v54 = vadd.f32 %v312_v49, %v277_v9 }
  0xd2   :  { %652 = vperm.xlu1 %1442, %v1353_v52   ;;  %696 = vperm.xlu2 %1443, %v1359_v53   ;;  %v1374_v52 = vld [vmem:[%s2107_s3 + $0x278] sm:$0xff]  ;;  %v1340_v53 = vld [vmem:[%s2109_s1 + $0xd] sm:$0x1] }
  0xd3   :  { %747 = vrot.lane.b32.xlu0 %v1552_v3, %s1467_s26 }
  0xd4   :  { %v346_v56 = vpop.permute.xlu1 %345  ;;  %v331_v57 = vpop.permute.xlu2 %330 }
  0xd5   :  { %v352_v58 = vmul.f32 %v348_v55, %v346_v56  ;;  %v349_v59 = vmul.f32 %v348_v55, %v331_v57  ;;  %v297_v60 = vpop.permute.xlu0 %296 }
  0xd6   :  { %v311_v61 = vmul.f32 %v309_v38, %v297_v60 }
  0xd7   :  { %v356_v62 = vadd.f32 %v352_v58, %v317_v51  ;;  %v1789_v63 = vadd.f32 %v349_v59, %v314_v42  ;;  %v1362_v42 = vld [vmem:[%s2107_s3 + $0x228] sm:$0xff]  ;;  %v1368_v51 = vld [vmem:[%s2107_s3 + $0x250] sm:$0xff] }
  0xd8   :  { %v315_v2 = vadd.f32 %v311_v61, %v276_v26 }
  0xd9   :  { %v395_v5 = vadd.f32 %v391_v36, %v356_v62  ;;  %v1361_v62 = vld [vmem:[%s2107_s3 + $0x220] sm:$0xff] }
  0xda   :  { %603 = vperm.xlu1 %1442, %v1346_v0   ;;  %647 = vperm.xlu2 %1443, %v1352_v1   ;;  %v1367_v0 = vld [vmem:[%s2107_s3 + $0x248] sm:$0xff] }
  0xdb   :  { %691 = vperm.xlu0 %1441, %v1358_v4  }
  0xdc   :  { %v341_v8 = vpop.permute.xlu1 %340  ;;  %v463_v9 = vpop.permute.xlu2 %462 }
  0xdd   :  { %v351_v10 = vmul.f32 %v348_v55, %v341_v8  ;;  %v436_v11 = vpop.permute.xlu0 %435 }
  0xde   :  { %v439_v12 = vmul.f32 %v1325_v6, %v436_v11 }
  0xdf   :  { %v355_v14 = vadd.f32 %v351_v10, %v316_v54 }
  0xe0   :  { %v1810_v16 = vperm.slane %v439_v12, 0 }
  0xe1   :  { %v394_v18 = vadd.f32 %v390_v47, %v355_v14 }
  0xe2   :  { %735 = vperm.xlu1 %1442, %v1364_v15   ;;  %786 = vrot.lane.b32.xlu2 %v1552_v3, %s1468_s25  ;;  %v469_v19 = vmul.f32 %v1810_v16, %v463_v9  ;;  %v1366_v15 = vld [vmem:[%s2107_s3 + $0x240] sm:$0xff] }
  0xe3   :  { %642 = vperm.xlu0 %1441, %v1351_v17  }
  0xe4   :  { %v336_v21 = vpop.permute.xlu1 %335  ;;  %v414_v22 = vpop.permute.xlu2 %413 }
  0xe5   :  { %v350_v23 = vmul.f32 %v348_v55, %v336_v21  ;;  %v428_v24 = vmul.f32 %v1817_v20, %v414_v22  ;;  %v424_v25 = vpop.permute.xlu0 %423 }
  0xe6   :  { %v430_v26 = vmul.f32 %v1817_v20, %v424_v25 }
  0xe7   :  { %v354_v27 = vadd.f32 %v350_v23, %v315_v2 }
  0xe8   :  { %v434_v30 = vadd.f32 %v430_v26, %v395_v5  ;;  %v1372_v26 = vld [vmem:[%s2107_s3 + $0x268] sm:$0xff] }
  0xea   :  { %686 = vperm.xlu1 %1442, %v1357_v28   ;;  %730 = vperm.xlu2 %1443, %v1363_v29   ;;  %v473_v33 = vadd.f32 %v469_v19, %v434_v30  ;;  %v1384_v29 = vld [vmem:[%s2107_s3 + $0x2b8] sm:$0xff]  ;;  %v1345_v30 = vld [vmem:[%s2109_s1 + $0xe] sm:$0x1] }
  0xeb   :  { %774 = vperm.xlu0 %1441, %v1369_v32  }
  0xec   :  { %v475_v35 = vpop.permute.xlu1 %474  ;;  %v553_v36 = vpop.permute.xlu2 %552 }
  0xed   :  { %v375_v37 = vpop.permute.xlu0 %374  ;;  %v478_v39 = vmul.f32 %v1330_v34, %v475_v35  ;;  %v556_v56 = vmul.f32 %v1340_v53, %v553_v36 }
  0xee   :  { %v389_v38 = vmul.f32 %v1763_v31, %v375_v37  ;;  %v1371_v37 = vld [vmem:[%s2107_s3 + $0x260] sm:$0xff] }
  0xef   :  { %v1841_v44 = vperm.slane %v478_v39, 0  ;;  %v1868_v2 = vperm.slane %v556_v56, 0  ;;  %v1377_v39 = vld [vmem:[%s2107_s3 + $0x288] sm:$0xff] }
  0xf0   :  { %v393_v41 = vadd.f32 %v389_v38, %v354_v27  ;;  %v1378_v27 = vld [vmem:[%s2107_s3 + $0x290] sm:$0xff] }
  0xf2   :  { %825 = vrot.lane.b32.xlu1 %v1552_v3, %s1469_s22  ;;  %681 = vperm.xlu2 %1443, %v1356_v40   ;;  %v432_v43 = vadd.f32 %v428_v24, %v393_v41 }
  0xf3   :  { %725 = vperm.xlu0 %1441, %v1362_v42  }
  0xf4   :  { %v419_v45 = vpop.permute.xlu1 %418  ;;  %v497_v46 = vpop.permute.xlu2 %496 }
  0xf5   :  { %v429_v47 = vmul.f32 %v1817_v20, %v419_v45  ;;  %v507_v48 = vmul.f32 %v1841_v44, %v497_v46  ;;  %v514_v49 = vpop.permute.xlu0 %513 }
  0xf7   :  { %v433_v50 = vadd.f32 %v429_v47, %v394_v18 }
  0xfa   :  { %769 = vperm.xlu1 %1442, %v1368_v51   ;;  %813 = vperm.xlu2 %1443, %v1374_v52   ;;  %v1355_v51 = vld [vmem:[%s2109_s1 + $0x10] sm:$0x1] }
  0xfb   :  { %864 = vrot.lane.b32.xlu0 %v1552_v3, %s1470_s14 }
  0xfc   :  { %v370_v54 = vpop.permute.xlu1 %369  ;;  %v448_v55 = vpop.permute.xlu2 %447 }
  0xfd   :  { %v388_v57 = vmul.f32 %v1763_v31, %v370_v54  ;;  %v466_v58 = vmul.f32 %v1810_v16, %v448_v55  ;;  %v458_v59 = vpop.permute.xlu0 %457  ;;  %v1373_v31 = vld [vmem:[%s2107_s3 + $0x270] sm:$0xff] }
  0xfe   :  { %v468_v60 = vmul.f32 %v1810_v16, %v458_v59 }
  0xff   :  { %v392_v61 = vadd.f32 %v388_v57, %v1789_v63  ;;  %v1335_v63 = vld [vmem:[%s2109_s1 + $0xc] sm:$0x1] }
 0x100   :  { %v472_v1 = vadd.f32 %v468_v60, %v433_v50  ;;  %v517_v11 = vmul.f32 %v1335_v63, %v514_v49  ;;  %v1383_v49 = vld [vmem:[%s2107_s3 + $0x2b0] sm:$0xff]  ;;  %v1376_v50 = vld [vmem:[%s2107_s3 + $0x280] sm:$0xff]  ;;  %v1382_v60 = vld [vmem:[%s2107_s3 + $0x2a8] sm:$0xff] }
 0x102   :  { %720 = vperm.xlu1 %1442, %v1361_v62   ;;  %764 = vperm.xlu2 %1443, %v1367_v0   ;;  %v511_v4 = vadd.f32 %v507_v48, %v472_v1  ;;  %v1883_v18 = vperm.slane %v517_v11, 0  ;;  %v1394_v0 = vld [vmem:[%s2107_s3 + $0x2f8] sm:$0xff]  ;;  %v1381_v11 = vld [vmem:[%s2107_s3 + $0x2a0] sm:$0xff] }
 0x103   :  { %808 = vperm.xlu0 %1441, %v1373_v31   ;;  %v1350_v31 = vld [vmem:[%s2109_s1 + $0xf] sm:$0x1] }
 0x104   :  { %v502_v5 = vpop.permute.xlu1 %501  ;;  %v580_v6 = vpop.permute.xlu2 %579 }
 0x105   :  { %v508_v7 = vmul.f32 %v1841_v44, %v502_v5  ;;  %v586_v8 = vmul.f32 %v1868_v2, %v580_v6  ;;  %v409_v9 = vpop.permute.xlu0 %408 }
 0x106   :  { %v427_v10 = vmul.f32 %v1817_v20, %v409_v9 }
 0x107   :  { %v512_v12 = vadd.f32 %v508_v7, %v473_v33 }
 0x108   :  { %v431_v14 = vadd.f32 %v427_v10, %v392_v61  ;;  %v1388_v61 = vld [vmem:[%s2107_s3 + $0x2d0] sm:$0xff] }
 0x10a   :  { %852 = vperm.xlu1 %1442, %v1379_v13   ;;  %903 = vrot.lane.b32.xlu2 %v1552_v3, %s1471_s29  ;;  %v470_v17 = vadd.f32 %v466_v58, %v431_v14  ;;  %v1393_v14 = vld [vmem:[%s2107_s3 + $0x2f0] sm:$0xff] }
 0x10b   :  { %759 = vperm.xlu0 %1441, %v1366_v15  }
 0x10c   :  { %v453_v19 = vpop.permute.xlu1 %452  ;;  %v531_v20 = vpop.permute.xlu2 %530 }
 0x10d   :  { %v467_v21 = vmul.f32 %v1810_v16, %v453_v19  ;;  %v545_v22 = vmul.f32 %v1883_v18, %v531_v20  ;;  %v541_v23 = vpop.permute.xlu0 %540 }
 0x10e   :  { %v547_v24 = vmul.f32 %v1883_v18, %v541_v23 }
 0x10f   :  { %v471_v25 = vadd.f32 %v467_v21, %v432_v43 }
 0x110   :  { %v551_v28 = vadd.f32 %v547_v24, %v512_v12  ;;  %v1387_v12 = vld [vmem:[%s2107_s3 + $0x2c8] sm:$0xff] }
 0x112   :  { %803 = vperm.xlu1 %1442, %v1372_v26   ;;  %847 = vperm.xlu2 %1443, %v1378_v27   ;;  %v590_v16 = vadd.f32 %v586_v8, %v551_v28  ;;  %v1392_v26 = vld [vmem:[%s2107_s3 + $0x2e8] sm:$0xff]  ;;  %v984_v28 = vld [vmem:[%s2110_s4 + $0x18] sm:$0xff] }
 0x113   :  { %891 = vperm.xlu0 %1441, %v1384_v29   ;;  %v1360_v29 = vld [vmem:[%s2109_s1 + $0x11] sm:$0x1] }
 0x114   :  { %v592_v32 = vpop.permute.xlu1 %591  ;;  %v670_v33 = vpop.permute.xlu2 %669 }
 0x115   :  { %v492_v34 = vpop.permute.xlu0 %491  ;;  %v595_v36 = vmul.f32 %v1345_v30, %v592_v32  ;;  %v673_v54 = vmul.f32 %v1355_v51, %v670_v33 }
 0x116   :  { %v506_v35 = vmul.f32 %v1841_v44, %v492_v34 }
 0x117   :  { %v1909_v41 = vperm.slane %v595_v36, 0  ;;  %v983_v36 = vld [vmem:[%s2110_s4 + $0x10] sm:$0xff] }
 0x118   :  { %v510_v38 = vadd.f32 %v506_v35, %v471_v25  ;;  %v1386_v25 = vld [vmem:[%s2107_s3 + $0x2c0] sm:$0xff] }
 0x119   :  { %v1391_v35 = vld [vmem:[%s2107_s3 + $0x2e0] sm:$0xff] }
 0x11a   :  { %942 = vrot.lane.b32.xlu1 %v1552_v3, %s1472_s27  ;;  %798 = vperm.xlu2 %1443, %v1371_v37   ;;  %v549_v40 = vadd.f32 %v545_v22, %v510_v38  ;;  %v1389_v3 = vld [vmem:[%s2107_s3 + $0x2d8] sm:$0xff]  ;;  %v982_v38 = vld [vmem:[%s2110_s4 + $0x8] sm:$0xff] }
 0x11b   :  { %842 = vperm.xlu0 %1441, %v1377_v39  }
 0x11c   :  { %v536_v42 = vpop.permute.xlu1 %535  ;;  %v614_v43 = vpop.permute.xlu2 %613 }
 0x11d   :  { %v546_v45 = vmul.f32 %v1883_v18, %v536_v42  ;;  %v624_v46 = vmul.f32 %v1909_v41, %v614_v43  ;;  %v631_v47 = vpop.permute.xlu0 %630 }
 0x11e   :  { %v634_v9 = vmul.f32 %v1350_v31, %v631_v47 }
 0x11f   :  { %v550_v48 = vadd.f32 %v546_v45, %v511_v4 }
 0x122   :  { %886 = vperm.xlu1 %1442, %v1383_v49   ;;  %930 = vperm.xlu2 %1443, %v1389_v3   ;;  %v981_v49 = vld [vmem:[%s2110_s4] sm:$0xff]  ;;  %v1016_v3 = vld [vmem:[%s2111_s6 + $0x8] sm:$0xff] }
 0x123   :  { %837 = vperm.xlu0 %1441, %v1376_v50   ;;  %v1015_v50 = vld [vmem:[%s2111_s6] sm:$0xff] }
 0x124   :  { %v487_v52 = vpop.permute.xlu1 %486  ;;  %v565_v53 = vpop.permute.xlu2 %564 }
 0x125   :  { %v505_v55 = vmul.f32 %v1841_v44, %v487_v52  ;;  %v583_v56 = vmul.f32 %v1868_v2, %v565_v53  ;;  %v575_v57 = vpop.permute.xlu0 %574  ;;  %v1937_v44 = vperm.slane %v673_v54, 0 }
 0x126   :  { %v585_v58 = vmul.f32 %v1868_v2, %v575_v57 }
 0x127   :  { %v509_v59 = vadd.f32 %v505_v55, %v470_v17  ;;  %v660_v17 = vperm.slane %v634_v9, 0 }
 0x128   :  { %v589_v62 = vadd.f32 %v585_v58, %v550_v48 }
 0x12a   :  { %881 = vperm.xlu1 %1442, %v1382_v60   ;;  %925 = vperm.xlu2 %1443, %v1388_v61   ;;  %v628_v1 = vadd.f32 %v624_v46, %v589_v62  ;;  %v1370_v62 = vld [vmem:[%s2109_s1 + $0x13] sm:$0x1] }
 0x12b   :  { %969 = vperm.xlu0 %1441, %v1394_v0   ;;  %v1365_v0 = vld [vmem:[%s2109_s1 + $0x12] sm:$0x1] }
 0x12c   :  { %v619_v4 = vpop.permute.xlu1 %618  ;;  %v697_v63 = vpop.permute.xlu2 %696 }
 0x12d   :  { %v625_v5 = vmul.f32 %v1909_v41, %v619_v4  ;;  %v703_v6 = vmul.f32 %v1937_v44, %v697_v63  ;;  %v526_v7 = vpop.permute.xlu0 %525 }
 0x12e   :  { %v544_v8 = vmul.f32 %v1883_v18, %v526_v7 }
 0x12f   :  { %v629_v10 = vadd.f32 %v625_v5, %v590_v16 }
 0x130   :  { %v548_v13 = vadd.f32 %v544_v8, %v509_v59 }
 0x132   :  { %876 = vperm.xlu1 %1442, %v1381_v11   ;;  %920 = vperm.xlu2 %1443, %v1387_v12   ;;  %v587_v15 = vadd.f32 %v583_v56, %v548_v13 }
 0x133   :  { %964 = vperm.xlu0 %1441, %v1393_v14  }
 0x134   :  { %v570_v18 = vpop.permute.xlu1 %569  ;;  %v648_v19 = vpop.permute.xlu2 %647 }
 0x135   :  { %v584_v20 = vmul.f32 %v1868_v2, %v570_v18  ;;  %v662_v21 = vmul.f32 %v660_v17, %v648_v19  ;;  %v658_v22 = vpop.permute.xlu0 %657 }
 0x136   :  { %v664_v23 = vmul.f32 %v660_v17, %v658_v22 }
 0x137   :  { %v588_v24 = vadd.f32 %v584_v20, %v549_v40 }
 0x138   :  { %v668_v27 = vadd.f32 %v664_v23, %v629_v10 }
 0x13a   :  { %915 = vperm.xlu1 %1442, %v1386_v25   ;;  %959 = vperm.xlu2 %1443, %v1392_v26   ;;  %v707_v2 = vadd.f32 %v703_v6, %v668_v27 }
 0x13b   :  { %1002 = vperm.xlu0 %1441, %v984_v28  }
 0x13c   :  { %v709_v16 = vpop.permute.xlu1 %708  ;;  %v787_v30 = vpop.permute.xlu2 %786 }
 0x13d   :  { %v609_v32 = vpop.permute.xlu0 %608  ;;  %v712_v34 = vmul.f32 %v1360_v29, %v709_v16  ;;  %v790_v63 = vmul.f32 %v1370_v62, %v787_v30 }
 0x13e   :  { %v623_v33 = vmul.f32 %v1909_v41, %v609_v32 }
 0x13f   :  { %v738_v40 = vperm.slane %v712_v34, 0  ;;  %v816_v8 = vperm.slane %v790_v63, 0 }
 0x140   :  { %v627_v37 = vadd.f32 %v623_v33, %v588_v24 }
 0x142   :  { %954 = vperm.xlu1 %1442, %v1391_v35   ;;  %997 = vperm.xlu2 %1443, %v983_v36   ;;  %v666_v39 = vadd.f32 %v662_v21, %v627_v37 }
 0x143   :  { %992 = vperm.xlu0 %1441, %v982_v38  }
 0x144   :  { %v653_v42 = vpop.permute.xlu1 %652  ;;  %v731_v43 = vpop.permute.xlu2 %730 }
 0x145   :  { %v663_v45 = vmul.f32 %v660_v17, %v653_v42  ;;  %v741_v46 = vmul.f32 %v738_v40, %v731_v43  ;;  %v748_v47 = vpop.permute.xlu0 %747 }
 0x146   :  { %v751_v5 = vmul.f32 %v1365_v0, %v748_v47 }
 0x147   :  { %v667_v48 = vadd.f32 %v663_v45, %v628_v1 }
 0x148   :  { %v777_v9 = vperm.slane %v751_v5, 0 }
 0x14a   :  { %987 = vperm.xlu1 %1442, %v981_v49   ;;  %1024 = vperm.xlu2 %1443, %v1016_v3  }
 0x14b   :  { %1019 = vperm.xlu0 %1441, %v1015_v50  }
 0x14c   :  { %v604_v51 = vpop.permute.xlu1 %603  ;;  %v682_v52 = vpop.permute.xlu2 %681 }
 0x14d   :  { %v622_v53 = vmul.f32 %v1909_v41, %v604_v51  ;;  %v700_v54 = vmul.f32 %v1937_v44, %v682_v52  ;;  %v692_v55 = vpop.permute.xlu0 %691 }
 0x14e   :  { %v702_v56 = vmul.f32 %v1937_v44, %v692_v55  ;;  %v1380_v55 = vld [vmem:[%s2109_s1 + $0x15] sm:$0x1] }
 0x14f   :  { %v626_v57 = vadd.f32 %v622_v53, %v587_v15 }
 0x150   :  { %v706_v58 = vadd.f32 %v702_v56, %v667_v48 }
 0x152   :  { %v745_v59 = vadd.f32 %v741_v46, %v706_v58 }
 0x154   :  { %v736_v60 = vpop.permute.xlu1 %735  ;;  %v814_v61 = vpop.permute.xlu2 %813 }
 0x155   :  { %v742_v1 = vmul.f32 %v738_v40, %v736_v60  ;;  %v643_v41 = vpop.permute.xlu0 %642  ;;  %v820_v18 = vmul.f32 %v816_v8, %v814_v61  ;;  %v1390_v61 = vld [vmem:[%s2109_s1 + $0x17] sm:$0x1] }
 0x156   :  { %v661_v31 = vmul.f32 %v660_v17, %v643_v41 }
 0x157   :  { %v746_v4 = vadd.f32 %v742_v1, %v707_v2 }
 0x158   :  { %v665_v6 = vadd.f32 %v661_v31, %v626_v57 }
 0x15a   :  { %v704_v7 = vadd.f32 %v700_v54, %v665_v6  ;;  %v1375_v54 = vld [vmem:[%s2109_s1 + $0x14] sm:$0x1] }
 0x15c   :  { %v687_v10 = vpop.permute.xlu1 %686  ;;  %v765_v12 = vpop.permute.xlu2 %764 }
 0x15d   :  { %v701_v11 = vmul.f32 %v1937_v44, %v687_v10  ;;  %v775_v13 = vpop.permute.xlu0 %774  ;;  %v779_v24 = vmul.f32 %v777_v9, %v765_v12 }
 0x15e   :  { %v781_v14 = vmul.f32 %v777_v9, %v775_v13 }
 0x15f   :  { %v705_v15 = vadd.f32 %v701_v11, %v666_v39 }
 0x160   :  { %v785_v19 = vadd.f32 %v781_v14, %v746_v4 }
 0x162   :  { %v824_v20 = vadd.f32 %v820_v18, %v785_v19 }
 0x164   :  { %v826_v21 = vpop.permute.xlu1 %825  ;;  %v904_v23 = vpop.permute.xlu2 %903 }
 0x165   :  { %v726_v22 = vpop.permute.xlu0 %725  ;;  %v829_v57 = vmul.f32 %v1375_v54, %v826_v21 }
 0x166   :  { %v740_v17 = vmul.f32 %v738_v40, %v726_v22 }
 0x167   :  { %v855_v0 = vperm.slane %v829_v57, 0 }
 0x168   :  { %v744_v25 = vadd.f32 %v740_v17, %v705_v15 }
 0x16a   :  { %v783_v26 = vadd.f32 %v779_v24, %v744_v25 }
 0x16c   :  { %v770_v27 = vpop.permute.xlu1 %769  ;;  %v848_v16 = vpop.permute.xlu2 %847 }
 0x16d   :  { %v780_v28 = vmul.f32 %v777_v9, %v770_v27  ;;  %v865_v2 = vpop.permute.xlu0 %864  ;;  %v858_v31 = vmul.f32 %v855_v0, %v848_v16 }
 0x16e   :  { %v868_v58 = vmul.f32 %v1380_v55, %v865_v2  ;;  %v1010_v55 = vld [vmem:[%s2112_s5 + $0x8] sm:$0xff] }
 0x16f   :  { %v784_v29 = vadd.f32 %v780_v28, %v745_v59  ;;  %v1385_v59 = vld [vmem:[%s2109_s1 + $0x16] sm:$0x1] }
 0x170   :  { %v894_v1 = vperm.slane %v868_v58, 0  ;;  %v907_v41 = vmul.f32 %v1385_v59, %v904_v23 }
 0x174   :  { %v721_v44 = vpop.permute.xlu1 %720  ;;  %v799_v36 = vpop.permute.xlu2 %798 }
 0x175   :  { %v739_v30 = vmul.f32 %v738_v40, %v721_v44  ;;  %v809_v32 = vpop.permute.xlu0 %808  ;;  %v817_v42 = vmul.f32 %v816_v8, %v799_v36 }
 0x176   :  { %v819_v33 = vmul.f32 %v816_v8, %v809_v32 }
 0x177   :  { %v743_v34 = vadd.f32 %v739_v30, %v704_v7 }
 0x178   :  { %v823_v35 = vadd.f32 %v819_v33, %v784_v29 }
 0x17a   :  { %v862_v7 = vadd.f32 %v858_v31, %v823_v35  ;;  %v1152_v31 = vld [vmem:[%s2116_s10] sm:$0xff] }
 0x17c   :  { %v853_v37 = vpop.permute.xlu1 %852  ;;  %v931_v47 = vpop.permute.xlu2 %930 }
 0x17d   :  { %v760_v38 = vpop.permute.xlu0 %759  ;;  %v859_v4 = vmul.f32 %v855_v0, %v853_v37 }
 0x17e   :  { %v778_v39 = vmul.f32 %v777_v9, %v760_v38  ;;  %v933_v9 = vperm.slane %v907_v41, 0  ;;  %v1105_v41 = vld [vmem:[%s2115_s8 + $0x8] sm:$0xff] }
 0x17f   :  { %v863_v10 = vadd.f32 %v859_v4, %v824_v20  ;;  %v1153_v4 = vld [vmem:[%s2116_s10 + $0x8] sm:$0xff] }
 0x180   :  { %v782_v43 = vadd.f32 %v778_v39, %v743_v34  ;;  %v937_v22 = vmul.f32 %v933_v9, %v931_v47 }
 0x182   :  { %v1996_v45 = vadd.f32 %v817_v42, %v782_v43 }
 0x184   :  { %v804_v46 = vpop.permute.xlu1 %803  ;;  %v926_v40 = vpop.permute.xlu2 %925 }
 0x185   :  { %v818_v48 = vmul.f32 %v816_v8, %v804_v46  ;;  %v892_v49 = vpop.permute.xlu0 %891  ;;  %v936_v15 = vmul.f32 %v933_v9, %v926_v40 }
 0x186   :  { %v898_v6 = vmul.f32 %v894_v1, %v892_v49 }
 0x187   :  { %v822_v3 = vadd.f32 %v818_v48, %v783_v26 }
 0x188   :  { %v902_v18 = vadd.f32 %v898_v6, %v863_v10  ;;  %v1226_v6 = vld [vmem:[%s2117_s11] sm:$0xff]  ;;  %v1227_v10 = vld [vmem:[%s2117_s11 + $0x8] sm:$0xff] }
 0x18a   :  { %v941_v27 = vadd.f32 %v937_v22, %v902_v18 }
 0x18c   :  { %v943_v50 = vpop.permute.xlu1 %942  ;;  %v921_v56 = vpop.permute.xlu2 %920 }
 0x18d   :  { %v843_v51 = vpop.permute.xlu0 %842  ;;  %v946_v63 = vmul.f32 %v1390_v61, %v943_v50  ;;  %v935_v44 = vmul.f32 %v933_v9, %v921_v56 }
 0x18e   :  { %v857_v19 = vmul.f32 %v855_v0, %v843_v51 }
 0x18f   :  { %v972_v11 = vperm.slane %v946_v63, 0  ;;  %v1104_v63 = vld [vmem:[%s2115_s8] sm:$0xff] }
 0x190   :  { %v861_v25 = vadd.f32 %v857_v19, %v822_v3  ;;  %v1447_v19 = vld [vmem:[%s2113_s2 + $0x2] ss:$0 sm:$0xff] }
 0x194   :  { %v887_v52 = vpop.permute.xlu1 %886  ;;  %v960_v8 = vpop.permute.xlu2 %959 }
 0x195   :  { %v838_v53 = vpop.permute.xlu0 %837  ;;  %v897_v5 = vmul.f32 %v894_v1, %v887_v52  ;;  %v974_v36 = vmul.f32 %v972_v11, %v960_v8  ;;  %v1228_v8 = vld [vmem:[%s2117_s11 + $0x10] sm:$0xff] }
 0x196   :  { %v856_v35 = vmul.f32 %v855_v0, %v838_v53 }
 0x197   :  { %v901_v12 = vadd.f32 %v897_v5, %v862_v7  ;;  %v1155_v5 = vld [vmem:[%s2116_s10 + $0x18] sm:$0xff]  ;;  %v1154_v7 = vld [vmem:[%s2116_s10 + $0x10] sm:$0xff] }
 0x198   :  { %v860_v43 = vadd.f32 %v856_v35, %v1996_v45  ;;  %v1009_v45 = vld [vmem:[%s2112_s5] sm:$0xff] }
 0x199   :  { %v940_v24 = vadd.f32 %v936_v15, %v901_v12 }
 0x19c   :  { %v882_v60 = vpop.permute.xlu1 %881  ;;  %v998_v16 = vpop.permute.xlu2 %997 }
 0x19d   :  { %v970_v62 = vpop.permute.xlu0 %969  ;;  %v896_v17 = vmul.f32 %v894_v1, %v882_v60 }
 0x19e   :  { %v976_v23 = vmul.f32 %v972_v11, %v970_v62 }
 0x19f   :  { %v900_v28 = vadd.f32 %v896_v17, %v861_v25 }
 0x1a0   :  { %v980_v29 = vadd.f32 %v976_v23, %v941_v27  ;;  %v1445_v23 = vld [vmem:[%s2113_s2 + $0x1] ss:$0 sm:$0xff] }
 0x1a1   :  { %v939_v34 = vadd.f32 %v935_v44, %v900_v28 }
 0x1a3   :  { %v978_v42 = vadd.f32 %v974_v36, %v939_v34  ;;  %v1103_v34 = vld [vmem:[%s2118_s7 + $0x8] sm:$0xff] }
 0x1a4   :  { %v877_v13 = vpop.permute.xlu1 %876  ;;  %v1025_v60 = vpop.permute.xlu2 %1024 }
 0x1a5   :  { %v965_v14 = vpop.permute.xlu0 %964  ;;  %v895_v38 = vmul.f32 %v894_v1, %v877_v13  ;;  %v18_v1 = vstv %s2114_s12  ;;  %v1444_v13 = vld [vmem:[%s2113_s2 + $0x3] ss:$0 sm:$0xff] }
 0x1a6   :  { %v975_v21 = vmul.f32 %v972_v11, %v965_v14  ;;  %19 = vst [vmem:[#allocation2] sm:$0x1] %v18_v1 }
 0x1a7   :  { %v899_v49 = vadd.f32 %v895_v38, %v860_v43 }
 0x1a8   :  { %v979_v26 = vadd.f32 %v975_v21, %v940_v24 }
 0x1aa   :  { %v2012_v32 = vadd.f32 %v998_v16, %v979_v26 }
 0x1ac   :  { %v916_v2 = vpop.permute.xlu1 %915  ;;  %v1013_v37 = vmax.f32 %v2012_v32, 0.0 }
 0x1ad   :  { %v1003_v20 = vpop.permute.xlu0 %1002  ;;  %v934_v46 = vmul.f32 %v933_v9, %v916_v2  ;;  %v1229_v9 = vld [vmem:[%s2117_s11 + $0x18] sm:$0xff]  ;;  %v1446_v2 = vld [vmem:[%s2113_s2] ss:$0 sm:$0xff] }
 0x1ae   :  { %v2010_v30 = vadd.f32 %v1003_v20, %v980_v29 }
 0x1af   :  { %v938_v51 = vadd.f32 %v934_v46, %v899_v49  ;;  %v1147_v49 = vld [vmem:[%s2119_s9 + $0x8] sm:$0xff] }
 0x1b0   :  { %v1014_v33 = vmax.f32 %v2010_v30, 0.0 }
 0x1b2   :  { %1046 = vmatpush.msra.mxu0 %v1014_v33  ;;  %v1102_v33 = vld [vmem:[%s2118_s7] sm:$0xff] }
 0x1b4   :  { %1047 = vmatpush.msra.mxu0 %v1013_v37  ;;  %v955_v39 = vpop.permute.xlu1 %954 }
 0x1b5   :  { %v993_v47 = vpop.permute.xlu0 %992  ;;  %v973_v3 = vmul.f32 %v972_v11, %v955_v39  ;;  %v1267_v11 = vld [vmem:[#allocation2] sm:$0x1] }
 0x1b6   :  { %v2017_v48 = vadd.f32 %v993_v47, %v978_v42  ;;  %v1146_v47 = vld [vmem:[%s2119_s9] sm:$0xff] }
 0x1b7   :  { %v977_v40 = vadd.f32 %v973_v3, %v938_v51  ;;  %v1148_v3 = vld [vmem:[%s2119_s9 + $0x10] sm:$0xff] }
 0x1b8   :  { %v1012_v50 = vmax.f32 %v2017_v48, 0.0 }
 0x1ba   :  { %1048 = vmatpush.msra.mxu0 %v1012_v50  ;;  %v1149_v50 = vld [vmem:[%s2119_s9 + $0x18] sm:$0xff] }
 0x1bc   :  { %v988_v52 = vpop.permute.xlu1 %987 }
 0x1bd   :  { %v2020_v53 = vadd.f32 %v988_v52, %v977_v40  ;;  %v1020_v56 = vpop.permute.xlu0 %1019 }
 0x1bf   :  { %v1011_v54 = vmax.f32 %v2020_v53, 0.0 }
 0x1c1   :  { %1049 = vmatpush.msra.mxu0 %v1011_v54 }
 0x1c2   :  { %1395 = vmatmul.msk.f32.vlgmr.msra.gmra.mxu0 %vm1027_vm0, %v1009_v45 }
 0x1ca   :  { %1396 = vmatmul.msk.f32.gmra.mxu0 %vm1027_vm0, %v1010_v55  ;;  %v1218_v55 = vmul.f32 2.0, %v2020_v53 }
 0x23f   :  { %v1051_v57 = vpop.f32.mrf.mxu0 }
 0x240   :  { %v1052_v58 = vadd.f32 %v1051_v57, %v1020_v56 }
 0x242   :  { %v1057_v59 = vmax.f32 %v1052_v58, 0.0  ;;  %v1219_v58 = vmul.f32 2.0, %v2017_v48  ;;  %v1221_v48 = vmul.f32 2.0, %v2010_v30 }
 0x244   :  { %1091 = vrot.lane.b32.xlu2 %v1057_v59, %s1472_s27 }
 0x247   :  { %v1054_v61 = vpop.f32.mrf.mxu0 }
 0x248   :  { %v1055_v62 = vadd.f32 %v1054_v61, %v1025_v60 }
 0x24a   :  { %v1058_v0 = vmax.f32 %v1055_v62, 0.0 }
 0x24c   :  { %1082 = vrot.lane.b32.xlu0 %v1058_v0, %s1467_s26  ;;  %1093 = vrot.lane.b32.xlu1 %v1058_v0, %s1472_s27 }
 0x24d   :  { %1129 = vmatpush.msra.mxu1 %v1058_v0  ;;  %1406 = vmatpush.msra.mxu3 %v1058_v0 }
 0x24e   :  { %1071 = vrot.lane.b32.xlu2 %v1058_v0, %s1466_s19 }
 0x24f   :  { %1130 = vmatpush.msra.mxu1 %v1057_v59  ;;  %1407 = vmatpush.msra.mxu3 %v1057_v59 }
 0x254   :  { %1069 = vrot.lane.b32.xlu0 %v1057_v59, %s1466_s19  ;;  %1080 = vrot.lane.b32.xlu1 %v1057_v59, %s1467_s26 }
 0x256   :  { %1059 = vrot.lane.b32.xlu2 %v1057_v59, %s1465_s23 }
 0x25c   :  { %1113 = vperm.xlu0 %1441, %v1105_v41   ;;  %1061 = vrot.lane.b32.xlu1 %v1058_v0, %s1465_s23 }
 0x25e   :  { %1158 = vperm.xlu2 %1443, %v1152_v31  }
 0x264   :  { %1163 = vperm.xlu0 %1441, %v1153_v4   ;;  %1108 = vperm.xlu1 %1442, %v1104_v63  }
 0x266   :  { %1173 = vperm.xlu2 %1443, %v1155_v5  }
 0x26c   :  { %1236 = vperm.xlu0 %1441, %v1226_v6   ;;  %1168 = vperm.xlu1 %1442, %v1154_v7   ;;  %v1220_v7 = vmul.f32 2.0, %v2012_v32 }
 0x26e   :  { %1246 = vperm.xlu2 %1443, %v1228_v8  }
 0x274   :  { %1251 = vperm.xlu0 %1441, %v1229_v9   ;;  %1241 = vperm.xlu1 %1442, %v1227_v10  }
 0x27c   :  { %1270 = vperm.xlu1 %1442, %v1267_v11  }
 0x29e   :  { %v1092_v12 = vpop.permute.xlu2 %1091 }
 0x29f   :  { %v1100_v21 = vmul.f32 %v1444_v13, %v1092_v12 }
 0x2a8   :  { %v1072_v17 = vpop.permute.xlu2 %1071 }
 0x2a9   :  { %v1079_v27 = vmul.f32 %v1445_v23, %v1072_v17 }
 0x2b0   :  { %v1060_v29 = vpop.permute.xlu2 %1059 }
 0x2b1   :  { %v1067_v44 = vmul.f32 %v1446_v2, %v1060_v29 }
 0x2b8   :  { %v1159_v40 = vpop.permute.xlu2 %1158 }
 0x2be   :  { %v1094_v14 = vpop.permute.xlu1 %1093  ;;  %v1083_v15 = vpop.permute.xlu0 %1082 }
 0x2bf   :  { %v1101_v18 = vmul.f32 %v1444_v13, %v1094_v14  ;;  %v1090_v22 = vmul.f32 %v1447_v19, %v1083_v15 }
 0x2c0   :  { %v1174_v62 = vpop.permute.xlu2 %1173 }
 0x2c1   :  { %1131 = vmatpush.msra.mxu1 %v1101_v18  ;;  %1408 = vmatpush.msra.mxu3 %v1101_v18 }
 0x2c3   :  { %1132 = vmatpush.msra.mxu1 %v1100_v21  ;;  %1409 = vmatpush.msra.mxu3 %v1100_v21 }
 0x2c5   :  { %1133 = vmatpush.msra.mxu1 %v1090_v22  ;;  %1410 = vmatpush.msra.mxu3 %v1090_v22 }
 0x2c6   :  { %v1081_v24 = vpop.permute.xlu1 %1080  ;;  %v1070_v26 = vpop.permute.xlu0 %1069 }
 0x2c7   :  { %v1089_v25 = vmul.f32 %v1447_v19, %v1081_v24  ;;  %v1078_v28 = vmul.f32 %v1445_v23, %v1070_v26 }
 0x2c8   :  { %v1247_v9 = vpop.permute.xlu2 %1246 }
 0x2c9   :  { %1134 = vmatpush.msra.mxu1 %v1089_v25  ;;  %1411 = vmatpush.msra.mxu3 %v1089_v25 }
 0x2cb   :  { %1135 = vmatpush.msra.mxu1 %v1079_v27  ;;  %1412 = vmatpush.msra.mxu3 %v1079_v27 }
 0x2cd   :  { %1136 = vmatpush.msra.mxu1 %v1078_v28  ;;  %1413 = vmatpush.msra.mxu3 %v1078_v28 }
 0x2ce   :  { %v1062_v16 = vpop.permute.xlu1 %1061  ;;  %v1114_v36 = vpop.permute.xlu0 %1113 }
 0x2cf   :  { %v1068_v20 = vmul.f32 %v1446_v2, %v1062_v16 }
 0x2d1   :  { %1137 = vmatpush.msra.mxu1 %v1068_v20  ;;  %1414 = vmatpush.msra.mxu3 %v1068_v20 }
 0x2d3   :  { %1138 = vmatpush.msra.mxu1 %v1067_v44  ;;  %1415 = vmatpush.msra.mxu3 %v1067_v44 }
 0x2d4   :  { %1400 = vmatmul.msk.f32.vlgmr.msra.gmra.mxu1 %vm1116_vm1, %v1102_v33  ;;  %1401 = vmatmul.msk.f32.vlgmr.msra.gmra.mxu3 %vm1116_vm1, %v1103_v34 }
 0x2d6   :  { %v1109_v37 = vpop.permute.xlu1 %1108  ;;  %v1164_v54 = vpop.permute.xlu0 %1163 }
 0x2de   :  { %v1169_v45 = vpop.permute.xlu1 %1168  ;;  %v1237_v1 = vpop.permute.xlu0 %1236 }
 0x2e6   :  { %v1242_v41 = vpop.permute.xlu1 %1241  ;;  %v1252_v18 = vpop.permute.xlu0 %1251 }
 0x2ee   :  { %v1271_v25 = vpop.permute.xlu1 %1270 }
 0x2ef   :  { %v1273_v26 = vperm.slane %v1271_v25, 0 }
 0x351   :  { %v1140_v35 = vpop.f32.mrf.mxu1 }
 0x352   :  { %v1141_v39 = vadd.f32 %v1140_v35, %v1109_v37 }
 0x354   :  { %v1150_v46 = vmax.f32 %v1141_v39, 0.0 }
 0x357   :  { %v1143_v38 = vpop.f32.mrf.mxu3 }
 0x358   :  { %v1144_v42 = vadd.f32 %v1143_v38, %v1114_v36 }
 0x35a   :  { %v1151_v43 = vmax.f32 %v1144_v42, 0.0 }
 0x35c   :  { %1203 = vmatpush.msra.mxu2 %v1151_v43 }
 0x35e   :  { %1204 = vmatpush.msra.mxu2 %v1150_v46 }
 0x35f   :  { %1402 = vmatmul.msk.f32.vlgmr.msra.gmra.mxu2 %vm1176_vm2, %v1146_v47 }
 0x367   :  { %1403 = vmatmul.msk.f32.gmra.mxu2 %vm1176_vm2, %v1147_v49 }
 0x36f   :  { %1404 = vmatmul.msk.f32.gmra.mxu2 %vm1176_vm2, %v1148_v3 }
 0x377   :  { %1405 = vmatmul.msk.f32.gmra.mxu2 %vm1176_vm2, %v1149_v50 }
 0x3e2   :  { %v1206_v51 = vpop.f32.mrf.mxu2 }
 0x3e3   :  { %v1207_v52 = vadd.f32 %v1206_v51, %v1159_v40 }
 0x3e5   :  { %v1222_v56 = vadd.f32 %v1218_v55, %v1207_v52 }
 0x3e7   :  { %v1230_v60 = vmax.f32 %v1222_v56, 0.0 }
 0x3e9   :  { %v1254_v31 = vmul.f32 %v1237_v1, %v1230_v60 }
 0x3ea   :  { %v1209_v57 = vpop.f32.mrf.mxu2 }
 0x3eb   :  { %v1210_v59 = vadd.f32 %v1209_v57, %v1164_v54 }
 0x3ed   :  { %v1223_v61 = vadd.f32 %v1219_v58, %v1210_v59 }
 0x3ef   :  { %v1231_v0 = vmax.f32 %v1223_v61, 0.0 }
 0x3f1   :  { %v1255_v4 = vmul.f32 %v1242_v41, %v1231_v0 }
 0x3f2   :  { %v1212_v63 = vpop.f32.mrf.mxu2 }
 0x3f3   :  { %v1258_v5 = vadd.f32 %v1255_v4, %v1254_v31  ;;  %v1213_v6 = vadd.f32 %v1212_v63, %v1169_v45 }
 0x3f5   :  { %v1224_v8 = vadd.f32 %v1220_v7, %v1213_v6 }
 0x3f7   :  { %v1232_v53 = vmax.f32 %v1224_v8, 0.0 }
 0x3f9   :  { %v1256_v10 = vmul.f32 %v1247_v9, %v1232_v53 }
 0x3fa   :  { %v1215_v11 = vpop.f32.mrf.mxu2 }
 0x3fb   :  { %v1259_v12 = vadd.f32 %v1258_v5, %v1256_v10  ;;  %v1216_v13 = vadd.f32 %v1215_v11, %v1174_v62 }
 0x3fd   :  { %v1225_v14 = vadd.f32 %v1221_v48, %v1216_v13 }
 0x3ff   :  { %v1233_v15 = vmax.f32 %v1225_v14, 0.0 }
 0x401   :  { %v1257_v19 = vmul.f32 %v1252_v18, %v1233_v15 }
 0x403   :  { %v1260_v21 = vadd.f32 %v1259_v12, %v1257_v19 }
 0x405   :  { %v1261_v22 = vrot.slane %v1260_v21, 4 }
 0x407   :  { %v1262_v17 = vadd.f32 %v1261_v22, %v1260_v21 }
 0x409   :  { %v1263_v23 = vrot.slane %v1262_v17, 2 }
 0x40b   :  { %v1264_v24 = vadd.f32 %v1263_v23, %v1262_v17 }
 0x40d   :  { %v1265_v32 = vrot.slane %v1264_v24, 1 }
 0x40f   :  { %v1266_v27 = vadd.f32 %v1265_v32, %v1264_v24 }
 0x411   :  { %v1274_v28 = vadd.f32 %v1273_v26, %v1266_v27 }
 0x413   :  { %1275 = vst [vmem:[%s2120_s13] sm:$0x1] %v1274_v28 }

</bundles_post_ra>
